<compile_context>
chip_gen: v7x
topology: tpu7x:2x2x1
jax: 0.10.0
libtpu: 0.0.40
codegen_flags: <defaults>
</compile_context>

<pallas_src>
import functools

import numpy as np
import jax
import jax.numpy as jnp
from jax.experimental import pallas as pl
from jax.experimental.pallas import tpu as pltpu


# ---------------------------------------------------------------------------
# Pallas kernel: softmax + class gather (one-hot matmul) + L1 cdist + GIoU
# ---------------------------------------------------------------------------
def _cost_kernel(neg_class_w, box_w, giou_w,
                 logits_ref, boxes_ref, onehot_ref, gtbt_ref, c_ref):
    # ---- class cost: softmax over classes, gathered at gt labels (one-hot MXU) ----
    logits = logits_ref[...].astype(jnp.float32)                 # (tq, Cp)
    m = jnp.max(logits, axis=-1, keepdims=True)
    e = jnp.exp(logits - m)                                      # EUP
    denom = jnp.sum(e, axis=-1, keepdims=True)                   # (tq, 1)
    gathered = jnp.dot(e, onehot_ref[...],
                       preferred_element_type=jnp.float32)       # (tq, Tp) MXU
    # fold -class_w into the cheap (tq,1) reciprocal (kept exact) before broadcasting
    scale = pl.reciprocal(denom) * neg_class_w                   # (tq, 1)
    # accumulate as each term finishes (short (tq,Tp) live ranges).  The "+ giou_w"
    # constant is the folded "-giou_w * (-1)" from giou = q*r - 1 further below.
    acc = gathered * scale + giou_w                              # (tq, Tp)

    # ---- boxes ----
    pb = boxes_ref[...].astype(jnp.float32)                      # (tq, 4)  cxcywh
    gt = gtbt_ref[...].astype(jnp.float32)                       # (4, Tp)  cxcywh
    pcx, pcy, pw, ph = pb[:, 0:1], pb[:, 1:2], pb[:, 2:3], pb[:, 3:4]   # (tq, 1)
    gcx, gcy, gw, gh = gt[0:1, :], gt[1:2, :], gt[2:3, :], gt[3:4, :]   # (1, Tp)

    # L1 cdist in cxcywh space (== torch.cdist(pred_boxes, gt_boxes, p=1))
    l1 = (jnp.abs(pcx - gcx) + jnp.abs(pcy - gcy)
          + jnp.abs(pw - gw) + jnp.abs(ph - gh))                 # (tq, Tp)
    acc = acc + box_w * l1

    # ---- GIoU cost ----
    px0, px1 = pcx - 0.5 * pw, pcx + 0.5 * pw                    # (tq, 1)
    py0, py1 = pcy - 0.5 * ph, pcy + 0.5 * ph
    gx0, gx1 = gcx - 0.5 * gw, gcx + 0.5 * gw                    # (1, Tp)
    gy0, gy1 = gcy - 0.5 * gh, gcy + 0.5 * gh
    parea = pw * ph                                              # (tq, 1)
    garea = gw * gh                                              # (1, Tp)

    iw = jnp.maximum(jnp.minimum(px1, gx1) - jnp.maximum(px0, gx0), 0.0)
    ih = jnp.maximum(jnp.minimum(py1, gy1) - jnp.maximum(py0, gy0), 0.0)
    inter = iw * ih                                              # (tq, Tp)
    union = (parea + garea) - inter                              # (tq, Tp)

    # enclosing box; w/h > 0 for valid normalised boxes, so the reference's
    # clip-at-0 is the identity and is omitted here (saves 2 full-tile maxes)
    ew = jnp.maximum(px1, gx1) - jnp.minimum(px0, gx0)
    eh = jnp.maximum(py1, gy1) - jnp.minimum(py0, gy0)
    earea = ew * eh                                              # (tq, Tp)

    # giou = inter/union + union/earea - 1
    #      = (inter*earea + union*union) * (1/(union*earea)) - 1
    # single full-tile reciprocal; approx seed runs on the (otherwise idle) EUP
    # slot, one Newton step restores ~1e-7 relative accuracy.
    d = union * earea
    r = pl.reciprocal(d, approx=True)
    r = r * (2.0 - d * r)                                        # Newton refinement
    q = inter * earea + union * union
    # cost contribution is -giou_w * giou; the +giou_w constant was folded into acc
    c_ref[...] = acc - giou_w * (q * r)


# ---------------------------------------------------------------------------
# Tile / VMEM sizing helpers
# ---------------------------------------------------------------------------
@functools.lru_cache(maxsize=1)
def _num_tensorcores():
    """Best-effort TensorCores-per-chip (v7x has 2, v5e/v6e have 1)."""
    try:
        info = pltpu.get_tpu_info()
        for name in ("tensorcores_per_chip", "num_tensorcores", "num_cores"):
            n = getattr(info, name, None)
            if n:
                return int(n)
    except Exception:
        pass
    try:
        kind = (jax.devices()[0].device_kind or "").lower()
    except Exception:
        return 1
    return 2 if ("v7" in kind or "7x" in kind) else 1


def _step_footprint_bytes(tq, nc_pad, t_pad):
    # double-buffered pipeline blocks + ~6 live (tq, T_pad) f32 temporaries
    return 4 * (2 * (tq * nc_pad + tq * 8 + nc_pad * t_pad + 8 * t_pad + tq * t_pad)
                + 6 * tq * t_pad)


def _choose_query_tile(N, requested, num_cores, nc_pad, t_pad,
                       budget=36 * 1024 * 1024):
    """Largest practical query tile (per-step pipeline overhead ~0.35us), padded N
    so the tile never has to divide N, >= num_cores grid steps on multi-TC chips
    (v7x), and shrunk if the per-step footprint would blow the scoped VMEM budget
    (v5e's 16 MiB default is the tightest, so we also raise vmem_limit_bytes)."""
    requested = max(8, min(int(requested), ((N + 7) // 8) * 8))
    steps = max(1, -(-N // requested))
    if num_cores >= 2:
        steps = max(steps, num_cores)       # feed both v7x TensorCores
    while True:
        tq = ((-(-N // steps) + 7) // 8) * 8
        if _step_footprint_bytes(tq, nc_pad, t_pad) <= budget or tq <= 64:
            break
        steps += 1
    n_pad = -(-N // tq) * tq
    return tq, n_pad


# ---------------------------------------------------------------------------
# jitted cost-matrix wrapper (prologue + pallas_call fused under one jit)
# ---------------------------------------------------------------------------
@functools.partial(jax.jit,
                   static_argnames=("class_cost", "box_cost", "giou_cost", "tq"))
def _cost_matrix_padded(pred_logits, pred_boxes, gt_labels, gt_boxes, *,
                        class_cost=1.0, box_cost=1.0, giou_cost=1.0, tq=1024):
    """Returns the padded (N_pad, T_pad) float32 cost matrix; valid block is [:N, :T]."""
    bs, nq, nc = pred_logits.shape
    N = bs * nq
    T = int(gt_boxes.shape[0])

    nc_pad = max(128, ((nc + 127) // 128) * 128)   # lane-dense softmax / aligned MXU K
    T_pad = max(128, ((T + 127) // 128) * 128)     # lane-dense (unmasked) output stores
    tq, N_pad = _choose_query_tile(N, tq, _num_tensorcores(), nc_pad, T_pad)

    logits = pred_logits.reshape(N, nc)            # native dtype; single cast in-kernel
    boxes = pred_boxes.reshape(N, 4)
    dummy_box = jnp.array([0.5, 0.5, 1.0, 1.0], jnp.float32)

    if N_pad > N:                                  # padded query rows (sliced off later)
        logits = jnp.concatenate(
            [logits, jnp.zeros((N_pad - N, nc), logits.dtype)], axis=0)
        boxes = jnp.concatenate(
            [boxes, jnp.broadcast_to(dummy_box.astype(boxes.dtype), (N_pad - N, 4))],
            axis=0)
    if nc_pad > nc:                                # softmax-neutral class padding
        logits = jnp.concatenate(
            [logits, jnp.full((N_pad, nc_pad - nc), -1e9, logits.dtype)], axis=1)

    labels = gt_labels.astype(jnp.int32)
    gtb = gt_boxes.astype(jnp.float32)
    if T_pad > T:
        labels = jnp.concatenate([labels, jnp.full((T_pad - T,), -1, jnp.int32)])
        gtb = jnp.concatenate(
            [gtb, jnp.broadcast_to(dummy_box, (T_pad - T, 4))], axis=0)
    onehot = jax.nn.one_hot(labels, nc_pad, dtype=jnp.float32).T   # (nc_pad, T_pad)
    gtbt = gtb.T                                                   # (4, T_pad)

    vmem_limit = int(min(max(_step_footprint_bytes(tq, nc_pad, T_pad) + (2 << 20),
                             32 << 20), 40 << 20))

    kernel = functools.partial(_cost_kernel,
                               -float(class_cost), float(box_cost), float(giou_cost))
    return pl.pallas_call(
        kernel,
        out_shape=jax.ShapeDtypeStruct((N_pad, T_pad), jnp.float32),
        grid=(N_pad // tq,),
        in_specs=[
            pl.BlockSpec((tq, nc_pad), lambda i: (i, 0)),     # logits tile
            pl.BlockSpec((tq, 4), lambda i: (i, 0)),          # pred boxes tile
            pl.BlockSpec((nc_pad, T_pad), lambda i: (0, 0)),  # one-hot labels (resident)
            pl.BlockSpec((4, T_pad), lambda i: (0, 0)),       # gt boxes^T (resident)
        ],
        out_specs=pl.BlockSpec((tq, T_pad), lambda i: (i, 0)),
        compiler_params=pltpu.CompilerParams(
            dimension_semantics=("parallel",),
            vmem_limit_bytes=vmem_limit),
    )(logits, boxes, onehot, gtbt)


def compute_cost_matrix(pred_logits, pred_boxes, gt_labels, gt_boxes,
                        class_cost=1.0, box_cost=1.0, giou_cost=1.0, tq=1024):
    bs, nq, _ = pred_logits.shape
    T = int(gt_boxes.shape[0])
    C_pad = _cost_matrix_padded(
        pred_logits, pred_boxes, gt_labels, gt_boxes,
        class_cost=float(class_cost), box_cost=float(box_cost),
        giou_cost=float(giou_cost), tq=int(tq))
    return C_pad[:bs * nq, :T].reshape(bs, nq, T)


# ---------------------------------------------------------------------------
# Host-side Hungarian algorithm (replaces scipy.optimize.linear_sum_assignment)
# TODO(synk): linear_sum_assignment is sequential/data-dependent -> host numpy.
# ---------------------------------------------------------------------------
def _lsa_rows_le_cols(cost):
    # Jonker-Volgenant / potentials method; requires rows <= cols.
    n, m = cost.shape
    INF = float("inf")
    u = [0.0] * (n + 1)
    v = [0.0] * (m + 1)
    p = [0] * (m + 1)
    way = [0] * (m + 1)
    for i in range(1, n + 1):
        p[0] = i
        j0 = 0
        minv = [INF] * (m + 1)
        used = [False] * (m + 1)
        while True:
            used[j0] = True
            i0 = p[j0]
            delta = INF
            j1 = 0
            for j in range(1, m + 1):
                if not used[j]:
                    cur = cost[i0 - 1, j - 1] - u[i0] - v[j]
                    if cur < minv[j]:
                        minv[j] = cur
                        way[j] = j0
                    if minv[j] < delta:
                        delta = minv[j]
                        j1 = j
            for j in range(m + 1):
                if used[j]:
                    u[p[j]] += delta
                    v[j] -= delta
                else:
                    minv[j] -= delta
            j0 = j1
            if p[j0] == 0:
                break
        while True:
            j1 = way[j0]
            p[j0] = p[j1]
            j0 = j1
            if j0 == 0:
                break
    ans = [0] * n
    for j in range(1, m + 1):
        if p[j] != 0:
            ans[p[j] - 1] = j - 1
    return np.arange(n), np.asarray(ans)


def linear_sum_assignment_np(cost):
    cost = np.asarray(cost, dtype=np.float64)
    nr, ncol = cost.shape
    if nr <= ncol:
        r, c = _lsa_rows_le_cols(cost)
    else:
        c, r = _lsa_rows_le_cols(cost.T)
        order = np.argsort(r)
        r, c = np.asarray(r)[order], np.asarray(c)[order]
    return r.astype(np.int64), c.astype(np.int64)


# ---------------------------------------------------------------------------
# HungarianMatcher
# ---------------------------------------------------------------------------
class HungarianMatcher:
    def __init__(self, class_cost=1.0, box_cost=1.0, giou_cost=1.0):
        self.class_cost = class_cost
        self.box_cost = box_cost
        self.giou_cost = giou_cost
        assert class_cost != 0 or box_cost != 0 or giou_cost != 0, "all cost can't be 0"

    def __call__(self, preds, targets):
        pred_logits = preds["pred_logits"]
        pred_boxes = preds["pred_boxes"]
        _, nq, _ = pred_logits.shape
        sizes = [int(l.shape[0]) for l in targets["labels"]]
        gt_labels = jnp.concatenate(targets["labels"])
        gt_boxes = jnp.concatenate(targets["boxes"])

        C_pad = _cost_matrix_padded(
            pred_logits, pred_boxes, gt_labels, gt_boxes,
            class_cost=float(self.class_cost), box_cost=float(self.box_cost),
            giou_cost=float(self.giou_cost))

        # slice per-image sub-costs directly off the padded kernel output so only
        # the needed columns cross PCIe (no intermediate full copy of C)
        subs = []
        off = 0
        for b, s in enumerate(sizes):
            subs.append(C_pad[b * nq:(b + 1) * nq, off:off + s])
            off += s
        subs_np = jax.device_get(subs)

        return [linear_sum_assignment_np(np.asarray(sub)) for sub in subs_np]


# ---------------------------------------------------------------------------
# Pure-JAX reference for the cost matrix (correctness check)
# ---------------------------------------------------------------------------
def reference_cost(pred_logits, pred_boxes, gt_labels, gt_boxes, wc, wb, wg):
    bs, nq, nc = pred_logits.shape
    probs = jax.nn.softmax(pred_logits.reshape(-1, nc).astype(jnp.float32), axis=-1)
    pb = pred_boxes.reshape(-1, 4).astype(jnp.float32)
    cls = -probs[:, gt_labels]
    box = jnp.sum(jnp.abs(pb[:, None, :] - gt_boxes[None, :, :]), axis=-1)

    def xyxy(b):
        cx, cy, w, h = b[..., 0], b[..., 1], b[..., 2], b[..., 3]
        return jnp.stack([cx - 0.5 * w, cy - 0.5 * h, cx + 0.5 * w, cy + 0.5 * h], axis=-1)

    b1, b2 = xyxy(pb), xyxy(gt_boxes)
    a1 = (b1[:, 2] - b1[:, 0]) * (b1[:, 3] - b1[:, 1])
    a2 = (b2[:, 2] - b2[:, 0]) * (b2[:, 3] - b2[:, 1])
    lt = jnp.maximum(b1[:, None, :2], b2[None, :, :2])
    rb = jnp.minimum(b1[:, None, 2:], b2[None, :, 2:])
    wh = jnp.clip(rb - lt, 0.0)
    inter = wh[..., 0] * wh[..., 1]
    union = a1[:, None] + a2[None, :] - inter
    iou = inter / union
    lt2 = jnp.minimum(b1[:, None, :2], b2[None, :, :2])
    rb2 = jnp.maximum(b1[:, None, 2:], b2[None, :, 2:])
    wh2 = jnp.clip(rb2 - lt2, 0.0)
    earea = wh2[..., 0] * wh2[..., 1]
    giou = iou - (earea - union) / earea
    C = wc * cls + wb * box + wg * (-giou)
    return C.reshape(bs, nq, -1)


if __name__ == "__main__":
    key = jax.random.PRNGKey(0)
    bs, num_queries, num_classes = 2, 64, 32
    sizes = [4, 6]
    total_gt = sum(sizes)

    k1, k2, k3, k4, k5 = jax.random.split(key, 5)
    pred_logits = jax.random.normal(k1, (bs, num_queries, num_classes), jnp.float32)
    pred_boxes = jax.nn.sigmoid(jax.random.normal(k2, (bs, num_queries, 4), jnp.float32))

    gt_labels_all = jax.random.randint(k3, (total_gt,), 0, num_classes, jnp.int32)
    gt_centers = jax.random.uniform(k4, (total_gt, 2), jnp.float32, 0.2, 0.8)
    gt_wh = jax.random.uniform(k5, (total_gt, 2), jnp.float32, 0.05, 0.3)
    gt_boxes_all = jnp.concatenate([gt_centers, gt_wh], axis=-1)

    # split into per-image target lists (mirrors the PyTorch dict-of-lists input)
    offs = np.cumsum([0] + sizes)
    targets = {
        "labels": [gt_labels_all[offs[i]:offs[i + 1]] for i in range(bs)],
        "boxes": [gt_boxes_all[offs[i]:offs[i + 1]] for i in range(bs)],
    }
    preds = {"pred_logits": pred_logits, "pred_boxes": pred_boxes}

    matcher = HungarianMatcher(class_cost=1.0, box_cost=1.0, giou_cost=1.0)
    indices = matcher(preds, targets)

    # correctness check of the Pallas cost matrix against a pure-JAX reference
    C = compute_cost_matrix(pred_logits, pred_boxes, gt_labels_all, gt_boxes_all,
                            1.0, 1.0, 1.0)
    jax.block_until_ready(C)
    C_ref = reference_cost(pred_logits, pred_boxes, gt_labels_all, gt_boxes_all,
                           1.0, 1.0, 1.0)
    np.testing.assert_allclose(np.asarray(C), np.asarray(C_ref), rtol=1e-5, atol=1e-5)

    # sanity on output format (one (i, j) pair per image, len == num gt)
    assert len(indices) == bs
    for (i, j), s in zip(indices, sizes):
        assert i.shape == (s,) and j.shape == (s,)
        assert len(set(i.tolist())) == s and len(set(j.tolist())) == s

    print("KERNEL_OK")
</pallas_src>

<mosaic_0001>
module attributes {stable_mosaic.version = 11 : i64} {
  func.func @_cost_kernel(%arg0: i32, %arg1: memref<128x128xf32, #tpu.memory_space<vmem>>, %arg2: memref<128x4xf32, #tpu.memory_space<vmem>>, %arg3: memref<128x128xf32, #tpu.memory_space<vmem>>, %arg4: memref<4x128xf32, #tpu.memory_space<vmem>>, %arg5: memref<128x128xf32, #tpu.memory_space<vmem>>) attributes {dimension_semantics = [#tpu.dimension_semantics<parallel>], iteration_bounds = array<i64: 1>, scalar_prefetch = 0 : i64, scratch_operands = 0 : i64, tpu.core_type = #tpu.core_type<tc>, window_params = [{transform_indices = @transform_0, window_bounds = array<i64: 128, 128>}, {transform_indices = @transform_1, window_bounds = array<i64: 128, 4>}, {pipeline_mode = #tpu.pipeline_mode<synchronous>, transform_indices = @transform_2, window_bounds = array<i64: 128, 128>}, {pipeline_mode = #tpu.pipeline_mode<synchronous>, transform_indices = @transform_3, window_bounds = array<i64: 4, 128>}, {transform_indices = @transform_4, window_bounds = array<i64: 128, 128>}]} {
    %c0 = arith.constant 0 : index
    %c0_0 = arith.constant 0 : index
    %0 = vector.load %arg1[%c0, %c0_0] : memref<128x128xf32, #tpu.memory_space<vmem>>, vector<128x128xf32>
    %cst = arith.constant dense<0xFF800000> : vector<128xf32>
    %1 = vector.multi_reduction <maximumf>, %0, %cst [1] : vector<128x128xf32> to vector<128xf32>
    %2 = vector.shape_cast %1 : vector<128xf32> to vector<128x1xf32>
    %3 = vector.broadcast %2 : vector<128x1xf32> to vector<128x128xf32>
    %4 = arith.subf %0, %3 : vector<128x128xf32>
    %5 = math.exp %4 : vector<128x128xf32>
    %cst_1 = arith.constant dense<0.000000e+00> : vector<128xf32>
    %6 = vector.multi_reduction <add>, %5, %cst_1 [1] : vector<128x128xf32> to vector<128xf32>
    %7 = vector.shape_cast %6 : vector<128xf32> to vector<128x1xf32>
    %c0_2 = arith.constant 0 : index
    %c0_3 = arith.constant 0 : index
    %8 = vector.load %arg3[%c0_2, %c0_3] : memref<128x128xf32, #tpu.memory_space<vmem>>, vector<128x128xf32>
    %cst_4 = arith.constant dense<0.000000e+00> : vector<128x128xf32>
    %9 = tpu.matmul %5, %8, %cst_4 {dimension_numbers = #tpu.dot_dimension_numbers<[1], [0], [0], [1], [0, 0, 1, 1], [], []>} : vector<128x128xf32>, vector<128x128xf32>, vector<128x128xf32> -> vector<128x128xf32>
    %10 = tpu.reciprocal %7 : vector<128x1xf32> -> vector<128x1xf32>
    %cst_5 = arith.constant -1.000000e+00 : f32
    %11 = vector.broadcast %cst_5 : f32 to vector<128x1xf32>
    %12 = arith.mulf %10, %11 : vector<128x1xf32>
    %13 = vector.broadcast %12 : vector<128x1xf32> to vector<128x128xf32>
    %14 = arith.mulf %9, %13 : vector<128x128xf32>
    %cst_6 = arith.constant 1.000000e+00 : f32
    %15 = vector.broadcast %cst_6 : f32 to vector<128x128xf32>
    %16 = arith.addf %14, %15 : vector<128x128xf32>
    %c0_7 = arith.constant 0 : index
    %c0_8 = arith.constant 0 : index
    %17 = vector.load %arg2[%c0_7, %c0_8] : memref<128x4xf32, #tpu.memory_space<vmem>>, vector<128x4xf32>
    %c0_9 = arith.constant 0 : index
    %c0_10 = arith.constant 0 : index
    %18 = vector.load %arg4[%c0_9, %c0_10] : memref<4x128xf32, #tpu.memory_space<vmem>>, vector<4x128xf32>
    %19 = vector.extract_strided_slice %17 {offsets = [0, 0], sizes = [128, 1], strides = [1, 1]} : vector<128x4xf32> to vector<128x1xf32>
    %20 = vector.extract_strided_slice %17 {offsets = [0, 1], sizes = [128, 1], strides = [1, 1]} : vector<128x4xf32> to vector<128x1xf32>
    %21 = vector.extract_strided_slice %17 {offsets = [0, 2], sizes = [128, 1], strides = [1, 1]} : vector<128x4xf32> to vector<128x1xf32>
    %22 = vector.extract_strided_slice %17 {offsets = [0, 3], sizes = [128, 1], strides = [1, 1]} : vector<128x4xf32> to vector<128x1xf32>
    %23 = vector.extract_strided_slice %18 {offsets = [0, 0], sizes = [1, 128], strides = [1, 1]} : vector<4x128xf32> to vector<1x128xf32>
    %24 = vector.extract_strided_slice %18 {offsets = [1, 0], sizes = [1, 128], strides = [1, 1]} : vector<4x128xf32> to vector<1x128xf32>
    %25 = vector.extract_strided_slice %18 {offsets = [2, 0], sizes = [1, 128], strides = [1, 1]} : vector<4x128xf32> to vector<1x128xf32>
    %26 = vector.extract_strided_slice %18 {offsets = [3, 0], sizes = [1, 128], strides = [1, 1]} : vector<4x128xf32> to vector<1x128xf32>
    %27 = vector.broadcast %19 : vector<128x1xf32> to vector<128x128xf32>
    %28 = vector.broadcast %23 : vector<1x128xf32> to vector<128x128xf32>
    %29 = arith.subf %27, %28 : vector<128x128xf32>
    %30 = math.absf %29 : vector<128x128xf32>
    %31 = vector.broadcast %20 : vector<128x1xf32> to vector<128x128xf32>
    %32 = vector.broadcast %24 : vector<1x128xf32> to vector<128x128xf32>
    %33 = arith.subf %31, %32 : vector<128x128xf32>
    %34 = math.absf %33 : vector<128x128xf32>
    %35 = arith.addf %30, %34 : vector<128x128xf32>
    %36 = vector.broadcast %21 : vector<128x1xf32> to vector<128x128xf32>
    %37 = vector.broadcast %25 : vector<1x128xf32> to vector<128x128xf32>
    %38 = arith.subf %36, %37 : vector<128x128xf32>
    %39 = math.absf %38 : vector<128x128xf32>
    %40 = arith.addf %35, %39 : vector<128x128xf32>
    %41 = vector.broadcast %22 : vector<128x1xf32> to vector<128x128xf32>
    %42 = vector.broadcast %26 : vector<1x128xf32> to vector<128x128xf32>
    %43 = arith.subf %41, %42 : vector<128x128xf32>
    %44 = math.absf %43 : vector<128x128xf32>
    %45 = arith.addf %40, %44 : vector<128x128xf32>
    %cst_11 = arith.constant 1.000000e+00 : f32
    %46 = vector.broadcast %cst_11 : f32 to vector<128x128xf32>
    %47 = arith.mulf %46, %45 : vector<128x128xf32>
    %48 = arith.addf %16, %47 : vector<128x128xf32>
    %cst_12 = arith.constant 5.000000e-01 : f32
    %49 = vector.broadcast %cst_12 : f32 to vector<128x1xf32>
    %50 = arith.mulf %49, %21 : vector<128x1xf32>
    %51 = arith.subf %19, %50 : vector<128x1xf32>
    %cst_13 = arith.constant 5.000000e-01 : f32
    %52 = vector.broadcast %cst_13 : f32 to vector<128x1xf32>
    %53 = arith.mulf %52, %21 : vector<128x1xf32>
    %54 = arith.addf %19, %53 : vector<128x1xf32>
    %cst_14 = arith.constant 5.000000e-01 : f32
    %55 = vector.broadcast %cst_14 : f32 to vector<128x1xf32>
    %56 = arith.mulf %55, %22 : vector<128x1xf32>
    %57 = arith.subf %20, %56 : vector<128x1xf32>
    %cst_15 = arith.constant 5.000000e-01 : f32
    %58 = vector.broadcast %cst_15 : f32 to vector<128x1xf32>
    %59 = arith.mulf %58, %22 : vector<128x1xf32>
    %60 = arith.addf %20, %59 : vector<128x1xf32>
    %cst_16 = arith.constant 5.000000e-01 : f32
    %61 = vector.broadcast %cst_16 : f32 to vector<1x128xf32>
    %62 = arith.mulf %61, %25 : vector<1x128xf32>
    %63 = arith.subf %23, %62 : vector<1x128xf32>
    %cst_17 = arith.constant 5.000000e-01 : f32
    %64 = vector.broadcast %cst_17 : f32 to vector<1x128xf32>
    %65 = arith.mulf %64, %25 : vector<1x128xf32>
    %66 = arith.addf %23, %65 : vector<1x128xf32>
    %cst_18 = arith.constant 5.000000e-01 : f32
    %67 = vector.broadcast %cst_18 : f32 to vector<1x128xf32>
    %68 = arith.mulf %67, %26 : vector<1x128xf32>
    %69 = arith.subf %24, %68 : vector<1x128xf32>
    %cst_19 = arith.constant 5.000000e-01 : f32
    %70 = vector.broadcast %cst_19 : f32 to vector<1x128xf32>
    %71 = arith.mulf %70, %26 : vector<1x128xf32>
    %72 = arith.addf %24, %71 : vector<1x128xf32>
    %73 = arith.mulf %21, %22 : vector<128x1xf32>
    %74 = arith.mulf %25, %26 : vector<1x128xf32>
    %75 = vector.broadcast %54 : vector<128x1xf32> to vector<128x128xf32>
    %76 = vector.broadcast %66 : vector<1x128xf32> to vector<128x128xf32>
    %77 = arith.minimumf %75, %76 : vector<128x128xf32>
    %78 = vector.broadcast %51 : vector<128x1xf32> to vector<128x128xf32>
    %79 = vector.broadcast %63 : vector<1x128xf32> to vector<128x128xf32>
    %80 = arith.maximumf %78, %79 : vector<128x128xf32>
    %81 = arith.subf %77, %80 : vector<128x128xf32>
    %cst_20 = arith.constant 0.000000e+00 : f32
    %82 = vector.broadcast %cst_20 : f32 to vector<128x128xf32>
    %83 = arith.maximumf %81, %82 : vector<128x128xf32>
    %84 = vector.broadcast %60 : vector<128x1xf32> to vector<128x128xf32>
    %85 = vector.broadcast %72 : vector<1x128xf32> to vector<128x128xf32>
    %86 = arith.minimumf %84, %85 : vector<128x128xf32>
    %87 = vector.broadcast %57 : vector<128x1xf32> to vector<128x128xf32>
    %88 = vector.broadcast %69 : vector<1x128xf32> to vector<128x128xf32>
    %89 = arith.maximumf %87, %88 : vector<128x128xf32>
    %90 = arith.subf %86, %89 : vector<128x128xf32>
    %cst_21 = arith.constant 0.000000e+00 : f32
    %91 = vector.broadcast %cst_21 : f32 to vector<128x128xf32>
    %92 = arith.maximumf %90, %91 : vector<128x128xf32>
    %93 = arith.mulf %83, %92 : vector<128x128xf32>
    %94 = vector.broadcast %73 : vector<128x1xf32> to vector<128x128xf32>
    %95 = vector.broadcast %74 : vector<1x128xf32> to vector<128x128xf32>
    %96 = arith.addf %94, %95 : vector<128x128xf32>
    %97 = arith.subf %96, %93 : vector<128x128xf32>
    %98 = vector.broadcast %54 : vector<128x1xf32> to vector<128x128xf32>
    %99 = vector.broadcast %66 : vector<1x128xf32> to vector<128x128xf32>
    %100 = arith.maximumf %98, %99 : vector<128x128xf32>
    %101 = vector.broadcast %51 : vector<128x1xf32> to vector<128x128xf32>
    %102 = vector.broadcast %63 : vector<1x128xf32> to vector<128x128xf32>
    %103 = arith.minimumf %101, %102 : vector<128x128xf32>
    %104 = arith.subf %100, %103 : vector<128x128xf32>
    %105 = vector.broadcast %60 : vector<128x1xf32> to vector<128x128xf32>
    %106 = vector.broadcast %72 : vector<1x128xf32> to vector<128x128xf32>
    %107 = arith.maximumf %105, %106 : vector<128x128xf32>
    %108 = vector.broadcast %57 : vector<128x1xf32> to vector<128x128xf32>
    %109 = vector.broadcast %69 : vector<1x128xf32> to vector<128x128xf32>
    %110 = arith.minimumf %108, %109 : vector<128x128xf32>
    %111 = arith.subf %107, %110 : vector<128x128xf32>
    %112 = arith.mulf %104, %111 : vector<128x128xf32>
    %113 = arith.mulf %97, %112 : vector<128x128xf32>
    %114 = tpu.reciprocal %113 {approx = true} : vector<128x128xf32> -> vector<128x128xf32>
    %115 = arith.mulf %113, %114 : vector<128x128xf32>
    %cst_22 = arith.constant 2.000000e+00 : f32
    %116 = vector.broadcast %cst_22 : f32 to vector<128x128xf32>
    %117 = arith.subf %116, %115 : vector<128x128xf32>
    %118 = arith.mulf %114, %117 : vector<128x128xf32>
    %119 = arith.mulf %93, %112 : vector<128x128xf32>
    %120 = arith.mulf %97, %97 : vector<128x128xf32>
    %121 = arith.addf %119, %120 : vector<128x128xf32>
    %122 = arith.mulf %121, %118 : vector<128x128xf32>
    %cst_23 = arith.constant 1.000000e+00 : f32
    %123 = vector.broadcast %cst_23 : f32 to vector<128x128xf32>
    %124 = arith.mulf %123, %122 : vector<128x128xf32>
    %125 = arith.subf %48, %124 : vector<128x128xf32>
    %c0_24 = arith.constant 0 : index
    %c0_25 = arith.constant 0 : index
    %126 = vector.load %arg5[%c0_24, %c0_25] : memref<128x128xf32, #tpu.memory_space<vmem>>, vector<128x128xf32>
    tpu.vector_store %arg5[%c0_24, %c0_25], %125 {strides = array<i32>} : memref<128x128xf32, #tpu.memory_space<vmem>>, vector<128x128xf32>,
    return
  }
  func.func @transform_0(%arg0: i32) -> (i32, i32) {
    %c0_i32 = arith.constant 0 : i32
    %c0_i32_0 = arith.constant 0 : i32
    return %arg0, %c0_i32 : i32, i32
  }
  func.func @transform_1(%arg0: i32) -> (i32, i32) {
    %c0_i32 = arith.constant 0 : i32
    %c0_i32_0 = arith.constant 0 : i32
    return %arg0, %c0_i32 : i32, i32
  }
  func.func @transform_2(%arg0: i32) -> (i32, i32) {
    %c0_i32 = arith.constant 0 : i32
    %c0_i32_0 = arith.constant 0 : i32
    %c0_i32_1 = arith.constant 0 : i32
    return %c0_i32, %c0_i32_0 : i32, i32
  }
  func.func @transform_3(%arg0: i32) -> (i32, i32) {
    %c0_i32 = arith.constant 0 : i32
    %c0_i32_0 = arith.constant 0 : i32
    %c0_i32_1 = arith.constant 0 : i32
    return %c0_i32, %c0_i32_0 : i32, i32
  }
  func.func @transform_4(%arg0: i32) -> (i32, i32) {
    %c0_i32 = arith.constant 0 : i32
    %c0_i32_0 = arith.constant 0 : i32
    return %arg0, %c0_i32 : i32, i32
  }
}

</mosaic_0001>

<bundles_post_ra>
// kernel: _cost_matrix_padded.1
= control target key start
LH: loop header
LB: loop body
LE: loop exit
PB: predicated region body
PF: predicated region fallthrough
CT: control target
= control target key end

     0   :  { %v2206_v4 = vmov 0   ;;  %s3899_s0 = inlined_call_operand.vmem [shape: f32[128,128], index: 0, kind: input, shape index: {}]   ;;  %s3900_s1 = inlined_call_operand.vmem [shape: f32[128,4], index: 1, kind: input, shape index: {}]   ;;  %s3901_s2 = inlined_call_operand.vmem [shape: f32[128,128], index: 2, kind: input, shape index: {}]   ;;  %s3902_s3 = inlined_call_operand.vmem [shape: f32[4,128], index: 3, kind: input, shape index: {}]   ;;  %s3903_s4 = inlined_call_operand.hbm [shape: f32[128,128], index: 4, kind: output, shape index: {}]  }
   0x1   :  { %v2243_v0 = vld [vmem:[%s3899_s0 + $0x10] sm:$0xff]  ;;  %v2248_v1 = vld [vmem:[%s3899_s0] sm:$0xff]  ;;  %v2255_v2 = vld [vmem:[%s3899_s0 + $0x18] sm:$0xff]  ;;  %2067 = vset.pattern.permute.xlu1 %v2206_v4 }
   0x2   :  { %38 = vmax.xlane.f32.xlu1 %v2243_v0  ;;  %34 = vmax.xlane.f32.xlu0 %v2248_v1  ;;  %v2260_v3 = vld [vmem:[%s3899_s0 + $0x8] sm:$0xff]  ;;  %v2273_v6 = vld [vmem:[%s3899_s0 + $0x20] sm:$0xff]  ;;  %v2280_v7 = vld [vmem:[%s3899_s0 + $0x38] sm:$0xff] }
   0x3   :  { %v2268_v5 = vld [vmem:[%s3899_s0 + $0x28] sm:$0xff]  ;;  %v2285_v8 = vld [vmem:[%s3899_s0 + $0x30] sm:$0xff]  ;;  %v146_v9 = vld [vmem:[%s3901_s2] sm:$0xff] }
   0x4   :  { %v147_v10 = vld [vmem:[%s3901_s2 + $0x8] sm:$0xff]  ;;  %v148_v11 = vld [vmem:[%s3901_s2 + $0x10] sm:$0xff]  ;;  %v149_v12 = vld [vmem:[%s3901_s2 + $0x18] sm:$0xff] }
   0x5   :  { %v2010_v13 = vpack.c.bf16 %v147_v10, %v146_v9  ;;  %v2014_v14 = vpack.c.bf16 %v149_v12, %v148_v11  ;;  %v150_v15 = vld [vmem:[%s3901_s2 + $0x20] sm:$0xff]  ;;  %v151_v16 = vld [vmem:[%s3901_s2 + $0x28] sm:$0xff] }
   0x6   :  { %40 = vmax.xlane.f32.xlu1 %v2255_v2  ;;  %36 = vmax.xlane.f32.xlu0 %v2260_v3 }
   0xa   :  { %44 = vmax.xlane.f32.xlu1 %v2268_v5  ;;  %42 = vmax.xlane.f32.xlu0 %v2273_v6 }
   0xe   :  { %48 = vmax.xlane.f32.xlu1 %v2280_v7  ;;  %46 = vmax.xlane.f32.xlu0 %v2285_v8 }
   0xf   :  { %9 = vsyncpa [#allocation3], 0  ;;  %v2310_v17 = vld [vmem:[%s3899_s0 + $0x48] sm:$0xff]  ;;  %v2315_v18 = vld [vmem:[%s3899_s0 + $0x40] sm:$0xff]  ;;  %2011 = vmatprep.subr.bf16.mxu0 %v2010_v13  ;;  %2042 = vmatprep.subr.bf16.mxu1 %v2010_v13  ;;  %v2018_v19 = vpack.c.bf16 %v151_v16, %v150_v15  ;;  %v2207_v51 = vmov 3   ;;  %v3906_v54 = vmov 1  }
  0x10   :  { %2013 = vmatpush3.bf16.msra.mxu0 %v2010_v13  ;;  %2050 = vmatpush3.bf16.msra.mxu1 %v2010_v13  ;;  %v152_v20 = vld [vmem:[%s3901_s2 + $0x30] sm:$0xff]  ;;  %v153_v21 = vld [vmem:[%s3901_s2 + $0x38] sm:$0xff]  ;;  %v154_v25 = vld [vmem:[%s3901_s2 + $0x40] sm:$0xff]  ;;  %v3904_v59 = vmov 2   ;;  %s2210_s29 = smov 126   ;;  %s2211_s30 = smov 127  }
  0x11   :  { %2015 = vmatprep.subr.bf16.mxu0 %v2014_v14  ;;  %2043 = vmatprep.subr.bf16.mxu1 %v2014_v14  ;;  %v2328_v22 = vld [vmem:[%s3899_s0 + $0x58] sm:$0xff]  ;;  %v2333_v23 = vld [vmem:[%s3899_s0 + $0x50] sm:$0xff]  ;;  %v2022_v24 = vpack.c.bf16 %v153_v21, %v152_v20  ;;  %v155_v26 = vld [vmem:[%s3901_s2 + $0x48] sm:$0xff] }
  0x12   :  { %52 = vmax.xlane.f32.xlu1 %v2310_v17  ;;  %50 = vmax.xlane.f32.xlu0 %v2315_v18  ;;  %v2346_v27 = vld [vmem:[%s3899_s0 + $0x68] sm:$0xff]  ;;  %v2351_v28 = vld [vmem:[%s3899_s0 + $0x60] sm:$0xff]  ;;  %v2026_v29 = vpack.c.bf16 %v155_v26, %v154_v25  ;;  %v156_v30 = vld [vmem:[%s3901_s2 + $0x50] sm:$0xff] }
  0x13   :  { %v157_v31 = vld [vmem:[%s3901_s2 + $0x58] sm:$0xff]  ;;  %v2369_v33 = vld [vmem:[%s3899_s0 + $0x70] sm:$0xff]  ;;  %v158_v35 = vld [vmem:[%s3901_s2 + $0x60] sm:$0xff]  ;;  %2071 = vset.pattern.permute.xlu0 %v2207_v51 }
  0x14   :  { %2017 = vmatpush3.bf16.msra.mxu0 %v2014_v14  ;;  %2051 = vmatpush3.bf16.msra.mxu1 %v2014_v14  ;;  %v2364_v32 = vld [vmem:[%s3899_s0 + $0x78] sm:$0xff]  ;;  %v2030_v34 = vpack.c.bf16 %v157_v31, %v156_v30  ;;  %v159_v36 = vld [vmem:[%s3901_s2 + $0x68] sm:$0xff]  ;;  %v160_v38 = vld [vmem:[%s3901_s2 + $0x70] sm:$0xff] }
  0x15   :  { %2019 = vmatprep.subr.bf16.mxu0 %v2018_v19  ;;  %2044 = vmatprep.subr.bf16.mxu1 %v2018_v19  ;;  %v2034_v37 = vpack.c.bf16 %v159_v36, %v158_v35  ;;  %v161_v39 = vld [vmem:[%s3901_s2 + $0x78] sm:$0xff]  ;;  %v2388_v41 = vld [vmem:[%s3900_s1 + $0x8] sm:$0xff]  ;;  %v2394_v42 = vld [vmem:[%s3900_s1 + $0x10] sm:$0xff] }
  0x16   :  { %56 = vmax.xlane.f32.xlu1 %v2328_v22  ;;  %54 = vmax.xlane.f32.xlu0 %v2333_v23  ;;  %v2038_v40 = vpack.c.bf16 %v161_v39, %v160_v38  ;;  %v2400_v43 = vld [vmem:[%s3900_s1 + $0x18] sm:$0xff]  ;;  %v2406_v44 = vld [vmem:[%s3900_s1 + $0x20] sm:$0xff]  ;;  %v2412_v45 = vld [vmem:[%s3900_s1 + $0x28] sm:$0xff] }
  0x17   :  { %v2418_v46 = vld [vmem:[%s3900_s1 + $0x30] sm:$0xff]  ;;  %v2424_v47 = vld [vmem:[%s3900_s1 + $0x38] sm:$0xff]  ;;  %v2430_v48 = vld [vmem:[%s3900_s1 + $0x40] sm:$0xff] }
  0x18   :  { %2021 = vmatpush3.bf16.msra.mxu0 %v2018_v19  ;;  %2052 = vmatpush3.bf16.msra.mxu1 %v2018_v19  ;;  %v2436_v49 = vld [vmem:[%s3900_s1 + $0x50] sm:$0xff]  ;;  %v2442_v50 = vld [vmem:[%s3900_s1 + $0x60] sm:$0xff]  ;;  %v2466_v55 = vld [vmem:[%s3900_s1 + $0x48] sm:$0xff] }
  0x19   :  { %2023 = vmatprep.subr.bf16.mxu0 %v2022_v24  ;;  %2045 = vmatprep.subr.bf16.mxu1 %v2022_v24  ;;  %v2449_v52 = vld [vmem:[%s3900_s1 + $0x70] sm:$0xff]  ;;  %v2455_v53 = vld [vmem:[%s3900_s1] sm:$0xff]  ;;  %v2472_v56 = vld [vmem:[%s3900_s1 + $0x58] sm:$0xff] }
  0x1a   :  { %60 = vmax.xlane.f32.xlu1 %v2346_v27  ;;  %58 = vmax.xlane.f32.xlu0 %v2351_v28  ;;  %v2478_v57 = vld [vmem:[%s3900_s1 + $0x68] sm:$0xff]  ;;  %v2484_v58 = vld [vmem:[%s3900_s1 + $0x78] sm:$0xff] }
  0x1c   :  { %2025 = vmatpush3.bf16.msra.mxu0 %v2022_v24  ;;  %2053 = vmatpush3.bf16.msra.mxu1 %v2022_v24 }
  0x1d   :  { %2027 = vmatprep.subr.bf16.mxu0 %v2026_v29  ;;  %2046 = vmatprep.subr.bf16.mxu1 %v2026_v29 }
  0x1e   :  { %64 = vmax.xlane.f32.xlu1 %v2364_v32  ;;  %62 = vmax.xlane.f32.xlu0 %v2369_v33 }
  0x20   :  { %2029 = vmatpush3.bf16.msra.mxu0 %v2026_v29  ;;  %2054 = vmatpush3.bf16.msra.mxu1 %v2026_v29 }
  0x21   :  { %2031 = vmatprep.subr.bf16.mxu0 %v2030_v34  ;;  %2047 = vmatprep.subr.bf16.mxu1 %v2030_v34 }
  0x24   :  { %2033 = vmatpush3.bf16.msra.mxu0 %v2030_v34  ;;  %2055 = vmatpush3.bf16.msra.mxu1 %v2030_v34 }
  0x25   :  { %2035 = vmatprep.subr.bf16.mxu0 %v2034_v37  ;;  %2048 = vmatprep.subr.bf16.mxu1 %v2034_v37 }
  0x28   :  { %2037 = vmatpush3.bf16.msra.mxu0 %v2034_v37  ;;  %2056 = vmatpush3.bf16.msra.mxu1 %v2034_v37 }
  0x29   :  { %2039 = vmatprep.subr.bf16.mxu0 %v2038_v40  ;;  %2049 = vmatprep.subr.bf16.mxu1 %v2038_v40 }
  0x2c   :  { %2041 = vmatpush3.bf16.msra.mxu0 %v2038_v40  ;;  %2057 = vmatpush3.bf16.msra.mxu1 %v2038_v40 }
  0x2f   :  { %395 = vperm.xlu1 %2067, %v2388_v41  }
  0x33   :  { %400 = vperm.xlu1 %2067, %v2394_v42  }
  0x37   :  { %405 = vperm.xlu1 %2067, %v2400_v43  }
  0x3b   :  { %410 = vperm.xlu1 %2067, %v2406_v44  }
  0x3f   :  { %415 = vperm.xlu1 %2067, %v2412_v45  }
  0x43   :  { %420 = vperm.xlu1 %2067, %v2418_v46  }
  0x47   :  { %425 = vperm.xlu1 %2067, %v2424_v47  }
  0x4b   :  { %430 = vperm.xlu1 %2067, %v2430_v48  }
  0x4f   :  { %440 = vperm.xlu1 %2067, %v2436_v49  }
  0x53   :  { %450 = vperm.xlu1 %2067, %v2442_v50  }
  0x57   :  { %460 = vperm.xlu1 %2067, %v2449_v52  }
  0x5b   :  { %2068 = vset.pattern.permute.xlu1 %v3906_v54 }
  0x5c   :  { %505 = vperm.xlu1 %2068, %v2455_v53  }
  0x60   :  { %513 = vperm.xlu1 %2068, %v2394_v42  }
  0x64   :  { %517 = vperm.xlu1 %2068, %v2400_v43  }
  0x68   :  { %525 = vperm.xlu1 %2068, %v2412_v45  }
  0x6c   :  { %533 = vperm.xlu1 %2068, %v2424_v47  }
  0x70   :  { %541 = vperm.xlu1 %2068, %v2466_v55  }
  0x74   :  { %549 = vperm.xlu1 %2068, %v2472_v56  }
  0x78   :  { %557 = vperm.xlu1 %2068, %v2478_v57  }
  0x7c   :  { %565 = vperm.xlu1 %2068, %v2484_v58  }
  0x80   :  { %2069 = vset.pattern.permute.xlu1 %v3904_v59 }
  0x81   :  { %625 = vperm.xlu1 %2069, %v2388_v41  }
  0x8f   :  { %v39_v60 = vpop.xlane.xlu1 %38  ;;  %v35_v61 = vpop.xlane.xlu0 %34 }
  0x90   :  { %v68_v62 = vsub.f32 %v2243_v0, %v39_v60  ;;  %v66_v63 = vsub.f32 %v2248_v1, %v35_v61 }
  0x92   :  { %v82_v9 = vmul.f32 1.442695, %v66_v63  ;;  %v86_v12 = vmul.f32 1.442695, %v68_v62 }
  0x93   :  { %v41_v10 = vpop.xlane.xlu1 %40  ;;  %v37_v11 = vpop.xlane.xlu0 %36 }
  0x94   :  { %v69_v13 = vsub.f32 %v2255_v2, %v41_v10  ;;  %v67_v14 = vsub.f32 %v2260_v3, %v37_v11  ;;  %2078 = vpow2.f32 %v82_v9 }
  0x95   :  { %2080 = vpow2.f32 %v86_v12 }
  0x96   :  { %v84_v15 = vmul.f32 1.442695, %v67_v14  ;;  %v88_v20 = vmul.f32 1.442695, %v69_v13 }
  0x97   :  { %v45_v16 = vpop.xlane.xlu1 %44  ;;  %v43_v19 = vpop.xlane.xlu0 %42 }
  0x98   :  { %v71_v21 = vsub.f32 %v2268_v5, %v45_v16  ;;  %v70_v0 = vsub.f32 %v2273_v6, %v43_v19  ;;  %2082 = vpow2.f32 %v84_v15 }
  0x99   :  { %2084 = vpow2.f32 %v88_v20 }
  0x9a   :  { %v90_v1 = vmul.f32 1.442695, %v70_v0  ;;  %v92_v26 = vmul.f32 1.442695, %v71_v21 }
  0x9b   :  { %v49_v24 = vpop.xlane.xlu1 %48  ;;  %v47_v25 = vpop.xlane.xlu0 %46 }
  0x9c   :  { %v73_v2 = vsub.f32 %v2280_v7, %v49_v24  ;;  %v72_v3 = vsub.f32 %v2285_v8, %v47_v25  ;;  %2086 = vpow2.f32 %v90_v1 }
  0x9d   :  { %2088 = vpow2.f32 %v92_v26 }
  0x9e   :  { %v94_v29 = vmul.f32 1.442695, %v72_v3  ;;  %v2079_v30 = vpop.eup %2078  ;;  %v96_v31 = vmul.f32 1.442695, %v73_v2 }
  0x9f   :  { %v53_v34 = vpop.xlane.xlu1 %52  ;;  %v51_v35 = vpop.xlane.xlu0 %50  ;;  %114 = vadd.xlane.f32.xlu0 %v2079_v30  ;;  %1986 = vmatprep.mubr.f32.mxu0 %v2079_v30 }
  0xa0   :  { %v75_v5 = vsub.f32 %v2310_v17, %v53_v34  ;;  %v74_v6 = vsub.f32 %v2315_v18, %v51_v35  ;;  %2090 = vpow2.f32 %v94_v29  ;;  %v2081_v36 = vpop.eup %2080 }
  0xa1   :  { %2092 = vpow2.f32 %v96_v31 }
  0xa2   :  { %v100_v37 = vmul.f32 1.442695, %v75_v5  ;;  %v98_v38 = vmul.f32 1.442695, %v74_v6  ;;  %v2083_v7 = vpop.eup %2082 }
  0xa3   :  { %v57_v8 = vpop.xlane.xlu1 %56  ;;  %v55_v39 = vpop.xlane.xlu0 %54  ;;  %118 = vadd.xlane.f32.xlu0 %v2081_v36  ;;  %1987 = vmatmul.mubr.f32.vlgmr.msra.gmra.mrb[0].mxu0 %v2083_v7 }
  0xa4   :  { %2094 = vpow2.f32 %v100_v37  ;;  %v77_v40 = vsub.f32 %v2328_v22, %v57_v8  ;;  %v76_v60 = vsub.f32 %v2333_v23, %v55_v39  ;;  %1989 = vmatprep.mubr.f32.mxu0 %v2081_v36  ;;  %v2085_v17 = vpop.eup %2084  ;;  %v870_v8 = vmul.f32 0.5, %v2394_v42 }
  0xa5   :  { %2096 = vpow2.f32 %v98_v38  ;;  %116 = vadd.xlane.f32.xlu1 %v2083_v7  ;;  %v868_v7 = vmul.f32 0.5, %v2455_v53 }
  0xa6   :  { %v104_v18 = vmul.f32 1.442695, %v77_v40  ;;  %v102_v61 = vmul.f32 1.442695, %v76_v60  ;;  %v2087_v62 = vpop.eup %2086  ;;  %v872_v40 = vmul.f32 0.5, %v2406_v44 }
  0xa7   :  { %v61_v63 = vpop.xlane.xlu1 %60  ;;  %v59_v9 = vpop.xlane.xlu0 %58  ;;  %1990 = vmatmul.mubr.f32.gmra.mrb[2].mxu0 %v2085_v17  ;;  %122 = vadd.xlane.f32.xlu0 %v2087_v62 }
  0xa8   :  { %2098 = vpow2.f32 %v104_v18  ;;  %v79_v10 = vsub.f32 %v2346_v27, %v61_v63  ;;  %v78_v22 = vsub.f32 %v2351_v28, %v59_v9  ;;  %1992 = vmatprep.mubr.f32.mxu0 %v2087_v62  ;;  %v2089_v23 = vpop.eup %2088  ;;  %v869_v18 = vmul.f32 0.5, %v2388_v41 }
  0xa9   :  { %2100 = vpow2.f32 %v102_v61  ;;  %120 = vadd.xlane.f32.xlu1 %v2085_v17  ;;  %v874_v17 = vmul.f32 0.5, %v2418_v46  ;;  %v876_v61 = vmul.f32 0.5, %v2430_v48  ;;  %v871_v63 = vmul.f32 0.5, %v2400_v43 }
  0xaa   :  { %v108_v11 = vmul.f32 1.442695, %v79_v10  ;;  %v106_v12 = vmul.f32 1.442695, %v78_v22  ;;  %v2091_v13 = vpop.eup %2090  ;;  %v878_v9 = vmul.f32 0.5, %v2436_v49  ;;  %v873_v22 = vmul.f32 0.5, %v2412_v45 }
  0xab   :  { %v65_v14 = vpop.xlane.xlu1 %64  ;;  %v63_v15 = vpop.xlane.xlu0 %62  ;;  %1993 = vmatmul.mubr.f32.gmra.mrb[4].mxu0 %v2089_v23  ;;  %126 = vadd.xlane.f32.xlu0 %v2091_v13 }
  0xac   :  { %2102 = vpow2.f32 %v108_v11  ;;  %v81_v16 = vsub.f32 %v2364_v32, %v65_v14  ;;  %v80_v27 = vsub.f32 %v2369_v33, %v63_v15  ;;  %v2093_v19 = vpop.eup %2092  ;;  %1995 = vmatprep.mubr.f32.mxu0 %v2091_v13  ;;  %v875_v11 = vmul.f32 0.5, %v2424_v47 }
  0xad   :  { %2104 = vpow2.f32 %v106_v12  ;;  %124 = vadd.xlane.f32.xlu1 %v2089_v23  ;;  %v880_v23 = vmul.f32 0.5, %v2442_v50  ;;  %v882_v12 = vmul.f32 0.5, %v2449_v52  ;;  %v879_v15 = vmul.f32 0.5, %v2472_v56 }
  0xae   :  { %v2095_v28 = vpop.eup %2094  ;;  %v112_v20 = vmul.f32 1.442695, %v81_v16  ;;  %v110_v21 = vmul.f32 1.442695, %v80_v27  ;;  %v881_v16 = vmul.f32 0.5, %v2478_v57 }
  0xaf   :  { %v2097_v0 = vpop.eup %2096  ;;  %1996 = vmatmul.mubr.f32.gmra.mrb[6].mxu0 %v2093_v19  ;;  %v2505_v24 = vpop.permute.xlu1 %395 }
  0xb0   :  { %2106 = vpow2.f32 %v112_v20  ;;  %130 = vadd.xlane.f32.xlu0 %v2097_v0  ;;  %1998 = vmatprep.mubr.f32.mxu1 %v2097_v0 }
  0xb1   :  { %2108 = vpow2.f32 %v110_v21  ;;  %128 = vadd.xlane.f32.xlu1 %v2093_v19  ;;  %1999 = vmatmul.mubr.f32.vlgmr.msra.gmra.mrb[0].mxu1 %v2095_v28  ;;  %v883_v19 = vmul.f32 0.5, %v2484_v58 }
  0xb2   :  { %v2099_v1 = vpop.eup %2098 }
  0xb3   :  { %v2101_v32 = vpop.eup %2100  ;;  %v2507_v3 = vpop.permute.xlu1 %400 }
  0xb4   :  { %134 = vadd.xlane.f32.xlu0 %v2101_v32  ;;  %2001 = vmatprep.mubr.f32.mxu1 %v2101_v32 }
  0xb5   :  { %132 = vadd.xlane.f32.xlu1 %v2095_v28  ;;  %2002 = vmatmul.mubr.f32.gmra.mrb[2].mxu1 %v2099_v1 }
  0xb6   :  { %v2103_v33 = vpop.eup %2102 }
  0xb7   :  { %v2105_v25 = vpop.eup %2104  ;;  %v2509_v29 = vpop.permute.xlu1 %405 }
  0xb8   :  { %138 = vadd.xlane.f32.xlu0 %v2105_v25  ;;  %2004 = vmatprep.mubr.f32.mxu1 %v2105_v25  ;;  %3928 = vst [vmem:[#allocation5_spill] sm:$0xff] %v2509_v29 }
  0xb9   :  { %136 = vadd.xlane.f32.xlu1 %v2099_v1  ;;  %2005 = vmatmul.mubr.f32.gmra.mrb[4].mxu1 %v2103_v33 }
  0xba   :  { %v2107_v26 = vpop.eup %2106 }
  0xbb   :  { %v2109_v2 = vpop.eup %2108  ;;  %v2511_v30 = vpop.permute.xlu1 %410 }
  0xbc   :  { %142 = vadd.xlane.f32.xlu0 %v2109_v2  ;;  %2007 = vmatprep.mubr.f32.mxu1 %v2109_v2 }
  0xbd   :  { %140 = vadd.xlane.f32.xlu1 %v2103_v33  ;;  %2008 = vmatmul.mubr.f32.gmra.mrb[6].mxu1 %v2107_v26 }
  0xbf   :  { %v2513_v31 = vpop.permute.xlu1 %415 }
  0xc0   :  { %3929 = vst [vmem:[#allocation6_spill] sm:$0xff] %v2513_v31 }
  0xc1   :  { %144 = vadd.xlane.f32.xlu1 %v2107_v26 }
  0xc3   :  { %v2517_v34 = vpop.permute.xlu1 %420 }
  0xc7   :  { %v2521_v35 = vpop.permute.xlu1 %425 }
  0xc8   :  { %3930 = vst [vmem:[#allocation7_spill] sm:$0xff] %v2521_v35 }
  0xcb   :  { %v2527_v5 = vpop.permute.xlu1 %430 }
  0xcf   :  { %v2531_v6 = vpop.permute.xlu1 %440 }
  0xd0   :  { %3931 = vst [vmem:[#allocation8_spill] sm:$0xff] %v2531_v6 }
  0xd2   :  { %741 = vperm.xlu0 %2071, %v2388_v41   ;;  %629 = vperm.xlu1 %2069, %v2394_v42  }
  0xd3   :  { %v2537_v36 = vpop.permute.xlu1 %450 }
  0xd4   :  { %3932 = vst [vmem:[#allocation9_spill] sm:$0xff] %v2537_v36 }
  0xd6   :  { %753 = vperm.xlu0 %2071, %v2406_v44   ;;  %637 = vperm.xlu1 %2069, %v2406_v44  }
  0xd7   :  { %v2543_v37 = vpop.permute.xlu1 %460 }
  0xd8   :  { %3933 = vst [vmem:[#allocation10_spill] sm:$0xff] %v2543_v37 }
  0xda   :  { %761 = vperm.xlu0 %2071, %v2418_v46   ;;  %645 = vperm.xlu1 %2069, %v2418_v46  }
  0xdb   :  { %v2549_v38 = vpop.permute.xlu1 %505 }
  0xdc   :  { %3934 = vst [vmem:[#allocation11_spill] sm:$0xff] %v2549_v38 }
  0xde   :  { %769 = vperm.xlu0 %2071, %v2430_v48   ;;  %653 = vperm.xlu1 %2069, %v2430_v48  }
  0xe2   :  { %777 = vperm.xlu0 %2071, %v2436_v49   ;;  %661 = vperm.xlu1 %2069, %v2436_v49  }
  0xe6   :  { %785 = vperm.xlu0 %2071, %v2442_v50   ;;  %669 = vperm.xlu1 %2069, %v2442_v50  }
  0xea   :  { %793 = vperm.xlu0 %2071, %v2449_v52   ;;  %677 = vperm.xlu1 %2069, %v2449_v52  }
  0xee   :  { %2072 = vset.pattern.permute.xlu0 %v2206_v4  ;;  %2070 = vset.pattern.permute.xlu1 %v2207_v51  ;;  %v2553_v51 = vpop.permute.xlu1 %513 }
  0xef   :  { %390 = vperm.xlu0 %2072, %v2455_v53   ;;  %737 = vperm.xlu1 %2070, %v2455_v53   ;;  %3935 = vst [vmem:[#allocation12_spill] sm:$0xff] %v2553_v51 }
  0xf2   :  { %v2561_v39 = vpop.permute.xlu1 %517 }
  0xf3   :  { %435 = vperm.xlu0 %2072, %v2466_v55   ;;  %745 = vperm.xlu1 %2070, %v2394_v42   ;;  %3936 = vst [vmem:[#allocation13_spill] sm:$0xff] %v2561_v39 }
  0xf6   :  { %v2566_v60 = vpop.permute.xlu1 %525 }
  0xf7   :  { %445 = vperm.xlu0 %2072, %v2472_v56   ;;  %749 = vperm.xlu1 %2070, %v2400_v43   ;;  %3937 = vst [vmem:[#allocation14_spill] sm:$0xff] %v2566_v60 }
  0xfa   :  { %v2575_v62 = vpop.permute.xlu1 %533 }
  0xfb   :  { %455 = vperm.xlu0 %2072, %v2478_v57   ;;  %757 = vperm.xlu1 %2070, %v2412_v45   ;;  %3938 = vst [vmem:[#allocation15_spill] sm:$0xff] %v2575_v62 }
  0xfe   :  { %v2582_v10 = vpop.permute.xlu1 %541 }
  0xff   :  { %465 = vperm.xlu0 %2072, %v2484_v58   ;;  %765 = vperm.xlu1 %2070, %v2424_v47   ;;  %3939 = vst [vmem:[#allocation16_spill] sm:$0xff] %v2582_v10 }
 0x102   :  { %v2592_v13 = vpop.permute.xlu1 %549 }
 0x103   :  { %773 = vperm.xlu1 %2070, %v2466_v55   ;;  %900 = vrot.lane.b32.xlu0 %v868_v7, %s2210_s29  ;;  %3940 = vst [vmem:[#allocation17_spill] sm:$0xff] %v2592_v13 }
 0x106   :  { %v2597_v14 = vpop.permute.xlu1 %557 }
 0x107   :  { %781 = vperm.xlu1 %2070, %v2472_v56   ;;  %904 = vrot.lane.b32.xlu0 %v870_v8, %s2210_s29  ;;  %3941 = vst [vmem:[#allocation18_spill] sm:$0xff] %v2597_v14 }
 0x10a   :  { %v2607_v27 = vpop.permute.xlu1 %565 }
 0x10b   :  { %789 = vperm.xlu1 %2070, %v2478_v57   ;;  %908 = vrot.lane.b32.xlu0 %v872_v40, %s2210_s29  ;;  %3942 = vst [vmem:[#allocation19_spill] sm:$0xff] %v2607_v27 }
 0x10e   :  { %v2615_v20 = vpop.permute.xlu1 %625 }
 0x10f   :  { %797 = vperm.xlu1 %2070, %v2484_v58   ;;  %912 = vrot.lane.b32.xlu0 %v874_v17, %s2210_s29 }
 0x113   :  { %902 = vrot.lane.b32.xlu1 %v869_v18, %s2210_s29  ;;  %916 = vrot.lane.b32.xlu0 %v876_v61, %s2210_s29 }
 0x114   :  { %2073 = vset.pattern.permute.xlu1 %v2206_v4  ;;  %v877_v4 = vmul.f32 0.5, %v2466_v55 }
 0x117   :  { %906 = vrot.lane.b32.xlu1 %v871_v63, %s2210_s29  ;;  %920 = vrot.lane.b32.xlu0 %v878_v9, %s2210_s29 }
 0x11b   :  { %910 = vrot.lane.b32.xlu1 %v873_v22, %s2210_s29  ;;  %924 = vrot.lane.b32.xlu0 %v880_v23, %s2210_s29 }
 0x11f   :  { %914 = vrot.lane.b32.xlu1 %v875_v11, %s2210_s29  ;;  %928 = vrot.lane.b32.xlu0 %v882_v12, %s2210_s29 }
 0x123   :  { %918 = vrot.lane.b32.xlu1 %v877_v4, %s2210_s29  ;;  %986 = vrot.lane.b32.xlu0 %v2455_v53, %s2211_s30 }
 0x127   :  { %922 = vrot.lane.b32.xlu1 %v879_v15, %s2210_s29  ;;  %990 = vrot.lane.b32.xlu0 %v2394_v42, %s2211_s30 }
 0x12b   :  { %926 = vrot.lane.b32.xlu1 %v881_v16, %s2210_s29  ;;  %994 = vrot.lane.b32.xlu0 %v2406_v44, %s2211_s30 }
 0x12c   :  { %v2613_v28 = vpop.xlane.xlu0 %114 }
 0x12d   :  { %3943 = vst [vmem:[#allocation20_spill] sm:$0xff] %v2613_v28 }
 0x12f   :  { %930 = vrot.lane.b32.xlu1 %v883_v19, %s2210_s29  ;;  %998 = vrot.lane.b32.xlu0 %v2418_v46, %s2211_s30 }
 0x130   :  { %v2620_v21 = vpop.xlane.xlu0 %118 }
 0x131   :  { %3944 = vst [vmem:[#allocation21_spill] sm:$0xff] %v2620_v21 }
 0x132   :  { %v2622_v0 = vpop.xlane.xlu1 %116 }
 0x133   :  { %1002 = vrot.lane.b32.xlu0 %v2430_v48, %s2211_s30  ;;  %988 = vrot.lane.b32.xlu1 %v2388_v41, %s2211_s30  ;;  %2110 = vrcp.f32 %v2622_v0 }
 0x134   :  { %v2628_v1 = vpop.xlane.xlu0 %122 }
 0x135   :  { %2112 = vrcp.f32 %v2628_v1 }
 0x136   :  { %v2630_v32 = vpop.xlane.xlu1 %120 }
 0x137   :  { %3945 = vst [vmem:[#allocation22_spill] sm:$0xff] %v2630_v32  ;;  %1006 = vrot.lane.b32.xlu0 %v2436_v49, %s2211_s30  ;;  %992 = vrot.lane.b32.xlu1 %v2400_v43, %s2211_s30 }
 0x138   :  { %v2636_v33 = vpop.xlane.xlu0 %126 }
 0x139   :  { %2114 = vrcp.f32 %v2636_v33 }
 0x13a   :  { %v2638_v25 = vpop.xlane.xlu1 %124 }
 0x13b   :  { %3946 = vst [vmem:[#allocation23_spill] sm:$0xff] %v2638_v25  ;;  %1010 = vrot.lane.b32.xlu0 %v2442_v50, %s2211_s30  ;;  %996 = vrot.lane.b32.xlu1 %v2412_v45, %s2211_s30 }
 0x13d   :  { %v2644_v26 = vpop.xlane.xlu0 %130 }
 0x13e   :  { %v2646_v2 = vpop.xlane.xlu1 %128  ;;  %2116 = vrcp.f32 %v2644_v26 }
 0x13f   :  { %3947 = vst [vmem:[#allocation24_spill] sm:$0xff] %v2646_v2  ;;  %1014 = vrot.lane.b32.xlu0 %v2449_v52, %s2211_s30  ;;  %1000 = vrot.lane.b32.xlu1 %v2424_v47, %s2211_s30 }
 0x141   :  { %v2652_v7 = vpop.xlane.xlu0 %134 }
 0x142   :  { %3948 = vst [vmem:[#allocation25_spill] sm:$0xff] %v2652_v7  ;;  %v2654_v8 = vpop.xlane.xlu1 %132 }
 0x143   :  { %3949 = vst [vmem:[#allocation26_spill] sm:$0xff] %v2654_v8  ;;  %1004 = vrot.lane.b32.xlu1 %v2466_v55, %s2211_s30 }
 0x145   :  { %v2658_v40 = vpop.xlane.xlu0 %138 }
 0x146   :  { %3950 = vst [vmem:[#allocation27_spill] sm:$0xff] %v2658_v40  ;;  %v2660_v17 = vpop.xlane.xlu1 %136 }
 0x147   :  { %3951 = vst [vmem:[#allocation28_spill] sm:$0xff] %v2660_v17  ;;  %1008 = vrot.lane.b32.xlu1 %v2472_v56, %s2211_s30 }
 0x149   :  { %v2666_v61 = vpop.xlane.xlu0 %142 }
 0x14a   :  { %v2664_v18 = vpop.xlane.xlu1 %140  ;;  %3953 = vst [vmem:[#allocation30_spill] sm:$0xff] %v2666_v61 }
 0x14b   :  { %3952 = vst [vmem:[#allocation29_spill] sm:$0xff] %v2664_v18  ;;  %1012 = vrot.lane.b32.xlu1 %v2478_v57, %s2211_s30 }
 0x14e   :  { %v2670_v63 = vpop.xlane.xlu1 %144 }
 0x14f   :  { %3954 = vst [vmem:[#allocation31_spill] sm:$0xff] %v2670_v63  ;;  %1016 = vrot.lane.b32.xlu1 %v2484_v58, %s2211_s30 }
 0x151   :  { %v2674_v9 = vpop.permute.xlu0 %741 }
 0x152   :  { %3955 = vst [vmem:[#allocation32_spill] sm:$0xff] %v2674_v9  ;;  %v2676_v22 = vpop.permute.xlu1 %629 }
 0x153   :  { %3956 = vst [vmem:[#allocation33_spill] sm:$0xff] %v2676_v22 }
 0x155   :  { %v2678_v23 = vpop.permute.xlu0 %753 }
 0x156   :  { %3957 = vst [vmem:[#allocation34_spill] sm:$0xff] %v2678_v23  ;;  %v2680_v11 = vpop.permute.xlu1 %637 }
 0x157   :  { %3958 = vst [vmem:[#allocation35_spill] sm:$0xff] %v2680_v11 }
 0x159   :  { %v2682_v12 = vpop.permute.xlu0 %761 }
 0x15a   :  { %3959 = vst [vmem:[#allocation36_spill] sm:$0xff] %v2682_v12  ;;  %v2684_v4 = vpop.permute.xlu1 %645 }
 0x15b   :  { %3960 = vst [vmem:[#allocation37_spill] sm:$0xff] %v2684_v4 }
 0x15d   :  { %v2686_v15 = vpop.permute.xlu0 %769 }
 0x15e   :  { %3961 = vst [vmem:[#allocation38_spill] sm:$0xff] %v2686_v15  ;;  %v2688_v16 = vpop.permute.xlu1 %653 }
 0x15f   :  { %3962 = vst [vmem:[#allocation39_spill] sm:$0xff] %v2688_v16 }
 0x161   :  { %v2690_v19 = vpop.permute.xlu0 %777 }
 0x162   :  { %3963 = vst [vmem:[#allocation40_spill] sm:$0xff] %v2690_v19  ;;  %v2692_v59 = vpop.permute.xlu1 %661 }
 0x163   :  { %3964 = vst [vmem:[#allocation41_spill] sm:$0xff] %v2692_v59 }
 0x165   :  { %v2694_v54 = vpop.permute.xlu0 %785 }
 0x166   :  { %3965 = vst [vmem:[#allocation42_spill] sm:$0xff] %v2694_v54  ;;  %v2696_v31 = vpop.permute.xlu1 %669 }
 0x167   :  { %3966 = vst [vmem:[#allocation43_spill] sm:$0xff] %v2696_v31 }
 0x169   :  { %v2698_v29 = vpop.permute.xlu0 %793 }
 0x16a   :  { %3967 = vst [vmem:[#allocation44_spill] sm:$0xff] %v2698_v29  ;;  %v2700_v60 = vpop.permute.xlu1 %677 }
 0x16b   :  { %3968 = vst [vmem:[#allocation45_spill] sm:$0xff] %v2700_v60 }
 0x16e   :  { %v2702_v39 = vpop.permute.xlu0 %390  ;;  %v2704_v38 = vpop.permute.xlu1 %737 }
 0x16f   :  { %3969 = vst [vmem:[#allocation46_spill] sm:$0xff] %v2702_v39  ;;  %3970 = vst [vmem:[#allocation47_spill] sm:$0xff] %v2704_v38 }
 0x172   :  { %v2706_v25 = vpop.permute.xlu0 %435  ;;  %v2708_v32 = vpop.permute.xlu1 %745 }
 0x173   :  { %3971 = vst [vmem:[#allocation48_spill] sm:$0xff] %v2706_v25  ;;  %3972 = vst [vmem:[#allocation49_spill] sm:$0xff] %v2708_v32 }
 0x176   :  { %v2710_v28 = vpop.permute.xlu0 %445  ;;  %v2712_v63 = vpop.permute.xlu1 %749 }
 0x177   :  { %3973 = vst [vmem:[#allocation50_spill] sm:$0xff] %v2710_v28  ;;  %3974 = vst [vmem:[#allocation51_spill] sm:$0xff] %v2712_v63  ;;  %v2714_v18 = vpop.f32.mrb[0].mxu0 }
 0x178   :  { %3975 = vst [vmem:[#allocation52_spill] sm:$0xff] %v2714_v18  ;;  %v2716_v22 = vpop.f32.mrb[1].mxu0 }
 0x179   :  { %3976 = vst [vmem:[#allocation53_spill] sm:$0xff] %v2716_v22 }
 0x17a   :  { %v2718_v17 = vpop.permute.xlu0 %455  ;;  %v2720_v27 = vpop.permute.xlu1 %757 }
 0x17b   :  { %3977 = vst [vmem:[#allocation54_spill] sm:$0xff] %v2718_v17  ;;  %3978 = vst [vmem:[#allocation55_spill] sm:$0xff] %v2720_v27  ;;  %v2722_v8 = vpop.f32.mrb[2].mxu0 }
 0x17c   :  { %3979 = vst [vmem:[#allocation56_spill] sm:$0xff] %v2722_v8  ;;  %v2724_v39 = vpop.f32.mrb[3].mxu0 }
 0x17d   :  { %3980 = vst [vmem:[#allocation57_spill] sm:$0xff] %v2724_v39 }
 0x17e   :  { %v2726_v38 = vpop.permute.xlu0 %465  ;;  %v2728_v25 = vpop.permute.xlu1 %765 }
 0x17f   :  { %3981 = vst [vmem:[#allocation58_spill] sm:$0xff] %v2726_v38  ;;  %3982 = vst [vmem:[#allocation59_spill] sm:$0xff] %v2728_v25  ;;  %v2730_v32 = vpop.f32.mrb[4].mxu0 }
 0x180   :  { %3983 = vst [vmem:[#allocation60_spill] sm:$0xff] %v2730_v32  ;;  %v2732_v28 = vpop.f32.mrb[5].mxu0 }
 0x181   :  { %3984 = vst [vmem:[#allocation61_spill] sm:$0xff] %v2732_v28 }
 0x182   :  { %v901_v63 = vpop.permute.xlu0 %900  ;;  %v2734_v2 = vpop.permute.xlu1 %773 }
 0x183   :  { %3985 = vst [vmem:[#allocation62_spill] sm:$0xff] %v2734_v2  ;;  %v2737_v22 = vadd.f32 %v901_v63, %v2455_v53  ;;  %v2739_v17 = vpop.f32.mrb[6].mxu0  ;;  %v2821_v7 = vsub.f32 %v2455_v53, %v901_v63 }
 0x184   :  { %3986 = vst [vmem:[#allocation63_spill] sm:$0xff] %v2739_v17  ;;  %v2741_v27 = vpop.f32.mrb[7].mxu0  ;;  %v2743_v8 = vpop.f32.mrb[0].mxu1 }
 0x185   :  { %3987 = vst [vmem:[#allocation64_spill] sm:$0xff] %v2741_v27  ;;  %3988 = vst [vmem:[#allocation65_spill] sm:$0xff] %v2743_v8  ;;  %1056 = vperm.xlu0 %2072, %v2737_v22   ;;  %v2746_v38 = vpop.f32.mrb[1].mxu1 }
 0x186   :  { %3989 = vst [vmem:[#allocation66_spill] sm:$0xff] %v2746_v38  ;;  %v2748_v25 = vpop.permute.xlu1 %781  ;;  %v905_v32 = vpop.permute.xlu0 %904 }
 0x187   :  { %3990 = vst [vmem:[#allocation67_spill] sm:$0xff] %v2748_v25  ;;  %v2825_v37 = vsub.f32 %v2394_v42, %v905_v32 }
 0x188   :  { %v2750_v39 = vpop.f32.mrb[2].mxu1 }
 0x189   :  { %3991 = vst [vmem:[#allocation68_spill] sm:$0xff] %v2750_v39  ;;  %v2752_v14 = vpop.f32.mrb[3].mxu1 }
 0x18a   :  { %3992 = vst [vmem:[#allocation69_spill] sm:$0xff] %v2752_v14  ;;  %v2754_v2 = vpop.permute.xlu1 %789  ;;  %v909_v13 = vpop.permute.xlu0 %908 }
 0x18b   :  { %3993 = vst [vmem:[#allocation70_spill] sm:$0xff] %v2754_v2  ;;  %v2771_v2 = vadd.f32 %v905_v32, %v2394_v42  ;;  %v2830_v36 = vsub.f32 %v2406_v44, %v909_v13 }
 0x18c   :  { %v2756_v10 = vpop.f32.mrb[4].mxu1 }
 0x18d   :  { %3994 = vst [vmem:[#allocation71_spill] sm:$0xff] %v2756_v10  ;;  %v2758_v17 = vpop.f32.mrb[5].mxu1 }
 0x18e   :  { %3995 = vst [vmem:[#allocation72_spill] sm:$0xff] %v2758_v17  ;;  %v2760_v29 = vpop.permute.xlu1 %797  ;;  %v913_v62 = vpop.permute.xlu0 %912 }
 0x18f   :  { %3996 = vst [vmem:[#allocation73_spill] sm:$0xff] %v2760_v29  ;;  %v2787_v31 = vadd.f32 %v913_v62, %v2418_v46  ;;  %v2835_v63 = vsub.f32 %v2418_v46, %v913_v62 }
 0x190   :  { %v2762_v8 = vpop.f32.mrb[6].mxu1 }
 0x191   :  { %3997 = vst [vmem:[#allocation74_spill] sm:$0xff] %v2762_v8  ;;  %v2764_v60 = vpop.f32.mrb[7].mxu1  ;;  %v2779_v8 = vadd.f32 %v909_v13, %v2406_v44 }
 0x192   :  { %3998 = vst [vmem:[#allocation75_spill] sm:$0xff] %v2764_v60  ;;  %v903_v25 = vpop.permute.xlu1 %902  ;;  %v917_v17 = vpop.permute.xlu0 %916 }
 0x193   :  { %v2767_v54 = vadd.f32 %v903_v25, %v2388_v41  ;;  %v2795_v19 = vadd.f32 %v917_v17, %v2430_v48  ;;  %v949_v11 = vsub.f32 %v2388_v41, %v903_v25  ;;  %v2840_v25 = vsub.f32 %v2430_v48, %v917_v17 }
 0x195   :  { %1061 = vperm.xlu1 %2073, %v2767_v54  }
 0x196   :  { %v907_v39 = vpop.permute.xlu1 %906  ;;  %v921_v51 = vpop.permute.xlu0 %920 }
 0x197   :  { %v2774_v10 = vadd.f32 %v907_v39, %v2400_v43  ;;  %v2803_v15 = vadd.f32 %v921_v51, %v2436_v49  ;;  %v951_v9 = vsub.f32 %v2400_v43, %v907_v39  ;;  %v2845_v13 = vsub.f32 %v2436_v49, %v921_v51 }
 0x199   :  { %1071 = vperm.xlu0 %2072, %v2774_v10   ;;  %1066 = vperm.xlu1 %2073, %v2771_v2  }
 0x19a   :  { %v911_v29 = vpop.permute.xlu1 %910  ;;  %v925_v27 = vpop.permute.xlu0 %924 }
 0x19b   :  { %v2782_v60 = vadd.f32 %v911_v29, %v2412_v45  ;;  %v2811_v12 = vadd.f32 %v925_v27, %v2442_v50  ;;  %v953_v6 = vsub.f32 %v2412_v45, %v911_v29  ;;  %v2850_v62 = vsub.f32 %v2442_v50, %v925_v27 }
 0x19d   :  { %1081 = vperm.xlu0 %2072, %v2782_v60   ;;  %1076 = vperm.xlu1 %2073, %v2779_v8  }
 0x19e   :  { %v915_v21 = vpop.permute.xlu1 %914  ;;  %v929_v40 = vpop.permute.xlu0 %928 }
 0x19f   :  { %v2790_v14 = vadd.f32 %v915_v21, %v2424_v47  ;;  %v2816_v23 = vadd.f32 %v929_v40, %v2449_v52  ;;  %v955_v32 = vsub.f32 %v2424_v47, %v915_v21  ;;  %v2855_v21 = vsub.f32 %v2449_v52, %v929_v40 }
 0x1a1   :  { %1091 = vperm.xlu0 %2072, %v2790_v14   ;;  %1086 = vperm.xlu1 %2073, %v2787_v31  }
 0x1a2   :  { %v919_v38 = vpop.permute.xlu1 %918 }
 0x1a3   :  { %v2798_v59 = vadd.f32 %v919_v38, %v2466_v55  ;;  %v957_v39 = vsub.f32 %v2466_v55, %v919_v38 }
 0x1a5   :  { %1101 = vperm.xlu0 %2072, %v2798_v59   ;;  %1096 = vperm.xlu1 %2073, %v2795_v19  }
 0x1a6   :  { %v923_v16 = vpop.permute.xlu1 %922 }
 0x1a7   :  { %v2806_v61 = vadd.f32 %v923_v16, %v2472_v56  ;;  %v959_v29 = vsub.f32 %v2472_v56, %v923_v16  ;;  %v3999_v56 = vmov 1  }
 0x1a9   :  { %1111 = vperm.xlu0 %2072, %v2806_v61   ;;  %1106 = vperm.xlu1 %2073, %v2803_v15  }
 0x1aa   :  { %v927_v4 = vpop.permute.xlu1 %926 }
 0x1ab   :  { %v977_v28 = vadd.f32 %v927_v4, %v2478_v57  ;;  %v961_v47 = vsub.f32 %v2478_v57, %v927_v4  ;;  %v2870_v57 = vpop.permute.xlu0 %986 }
 0x1ad   :  { %1121 = vperm.xlu0 %2072, %v977_v28   ;;  %1116 = vperm.xlu1 %2073, %v2811_v12  }
 0x1ae   :  { %v931_v35 = vpop.permute.xlu1 %930 }
 0x1af   :  { %v979_v18 = vadd.f32 %v931_v35, %v2484_v58  ;;  %v963_v38 = vsub.f32 %v2484_v58, %v931_v35  ;;  %v991_v35 = vpop.permute.xlu0 %990 }
 0x1b1   :  { %1131 = vperm.xlu0 %2072, %v979_v18   ;;  %1126 = vperm.xlu1 %2073, %v2816_v23  }
 0x1b2   :  { %v989_v58 = vpop.permute.xlu1 %988 }
 0x1b5   :  { %1161 = vperm.xlu0 %2072, %v949_v11   ;;  %1156 = vperm.xlu1 %2073, %v2821_v7  }
 0x1b6   :  { %v2876_v51 = vpop.permute.xlu1 %992 }
 0x1b9   :  { %1171 = vperm.xlu0 %2072, %v951_v9   ;;  %1166 = vperm.xlu1 %2073, %v2825_v37  }
 0x1bd   :  { %1181 = vperm.xlu0 %2072, %v953_v6   ;;  %1176 = vperm.xlu1 %2073, %v2830_v36  }
 0x1c1   :  { %1191 = vperm.xlu0 %2072, %v955_v32   ;;  %1186 = vperm.xlu1 %2073, %v2835_v63  }
 0x1c5   :  { %1201 = vperm.xlu0 %2072, %v957_v39   ;;  %1196 = vperm.xlu1 %2073, %v2840_v25  }
 0x1c9   :  { %1211 = vperm.xlu0 %2072, %v959_v29   ;;  %1206 = vperm.xlu1 %2073, %v2845_v13  }
 0x1cd   :  { %1221 = vperm.xlu0 %2072, %v961_v47   ;;  %1216 = vperm.xlu1 %2073, %v2850_v62  }
 0x1d1   :  { %1231 = vperm.xlu0 %2072, %v963_v38   ;;  %1226 = vperm.xlu1 %2073, %v2855_v21  }
 0x1d5   :  { %2074 = vset.pattern.permute.xlu0 %v3999_v56  ;;  %2075 = vset.pattern.permute.xlu1 %v3999_v56 }
 0x1d6   :  { %509 = vperm.xlu0 %2074, %v2388_v41   ;;  %1287 = vperm.xlu1 %2075, %v2737_v22  }
 0x1da   :  { %521 = vperm.xlu0 %2074, %v2406_v44   ;;  %1295 = vperm.xlu1 %2075, %v2771_v2  }
 0x1de   :  { %529 = vperm.xlu0 %2074, %v2418_v46   ;;  %1299 = vperm.xlu1 %2075, %v2774_v10   ;;  %v995_v10 = vpop.permute.xlu0 %994 }
 0x1e2   :  { %537 = vperm.xlu0 %2074, %v2430_v48   ;;  %1307 = vperm.xlu1 %2075, %v2782_v60   ;;  %v2880_v60 = vpop.permute.xlu1 %996  ;;  %v999_v27 = vpop.permute.xlu0 %998 }
 0x1e6   :  { %545 = vperm.xlu0 %2074, %v2436_v49   ;;  %1315 = vperm.xlu1 %2075, %v2790_v14   ;;  %v2884_v14 = vpop.permute.xlu1 %1000 }
 0x1ea   :  { %553 = vperm.xlu0 %2074, %v2442_v50   ;;  %1323 = vperm.xlu1 %2075, %v2798_v59   ;;  %v1003_v59 = vpop.permute.xlu0 %1002  ;;  %v2887_v2 = vpop.permute.xlu1 %1004 }
 0x1ee   :  { %561 = vperm.xlu0 %2074, %v2449_v52   ;;  %1331 = vperm.xlu1 %2075, %v2806_v61   ;;  %v1007_v40 = vpop.permute.xlu0 %1006  ;;  %v1035_v61 = vmul.f32 %v989_v58, %v2388_v41  ;;  %v468_v41 = vlaneseq }
 0x1f2   :  { %1291 = vperm.xlu0 %2074, %v2767_v54   ;;  %1339 = vperm.xlu1 %2075, %v977_v28   ;;  %v2891_v54 = vpop.permute.xlu1 %1008  ;;  %v1011_v28 = vpop.permute.xlu0 %1010 }
 0x1f6   :  { %1303 = vperm.xlu0 %2074, %v2779_v8   ;;  %1347 = vperm.xlu1 %2075, %v979_v18   ;;  %v2894_v8 = vpop.permute.xlu1 %1012 }
 0x1fa   :  { %1311 = vperm.xlu0 %2074, %v2787_v31   ;;  %1375 = vperm.xlu1 %2075, %v949_v11   ;;  %v2897_v31 = vpop.permute.xlu0 %1014  ;;  %v2900_v17 = vpop.permute.xlu1 %1016 }
 0x1fe   :  { %1319 = vperm.xlu0 %2074, %v2795_v19   ;;  %1383 = vperm.xlu1 %2075, %v951_v9   ;;  %v2931_v19 = vshrl.u32 %v468_v41, 7 }
 0x200   :  { %v802_v1 = vsub.s32 3, %v2931_v19 }
 0x202   :  { %1327 = vperm.xlu0 %2074, %v2803_v15   ;;  %1391 = vperm.xlu1 %2075, %v953_v6  }
 0x204   :  { %v2903_v6 = vpop.permute.xlu0 %1056 }
 0x206   :  { %1335 = vperm.xlu0 %2074, %v2811_v12   ;;  %1399 = vperm.xlu1 %2075, %v955_v32   ;;  %v1036_v12 = vmul.f32 %v991_v35, %v2394_v42 }
 0x20a   :  { %1343 = vperm.xlu0 %2074, %v2816_v23   ;;  %1407 = vperm.xlu1 %2075, %v957_v39  }
 0x20e   :  { %1371 = vperm.xlu0 %2074, %v2821_v7   ;;  %1415 = vperm.xlu1 %2075, %v959_v29   ;;  %v2916_v7 = vld [vmem:[%s3902_s3] sm:$0xf]  ;;  %v1040_v29 = vmul.f32 %v999_v27, %v2418_v46 }
 0x20f   :  { %v980_v23 = vmul.f32 0.5, %v2916_v7  ;;  %v3194_v26 = vrot.slane %v2916_v7, %v802_v1 }
 0x211   :  { %v982_v4 = vrot.slane %v980_v23, 2 }
 0x212   :  { %1379 = vperm.xlu0 %2074, %v2825_v37   ;;  %1423 = vperm.xlu1 %2075, %v961_v47   ;;  %v4000_v37 = vmov 2  }
 0x213   :  { %v2936_v32 = vadd.f32 %v982_v4, %v2916_v7  ;;  %v2966_v35 = vsub.f32 %v2916_v7, %v982_v4  ;;  %v1048_v4 = vmul.f32 %v2897_v31, %v2449_v52 }
 0x214   :  { %v2905_v18 = vpop.permute.xlu1 %1061 }
 0x216   :  { %1387 = vperm.xlu0 %2074, %v2830_v36   ;;  %1431 = vperm.xlu1 %2075, %v963_v38   ;;  %v1042_v38 = vmul.f32 %v1003_v59, %v2430_v48 }
 0x218   :  { %v2909_v9 = vpop.permute.xlu1 %1066  ;;  %v2911_v22 = vpop.permute.xlu0 %1071 }
 0x21a   :  { %1395 = vperm.xlu0 %2074, %v2835_v63   ;;  %2077 = vset.pattern.permute.xlu1 %v4000_v37  ;;  %v1038_v63 = vmul.f32 %v995_v10, %v2406_v44  ;;  %v1044_v10 = vmul.f32 %v1007_v40, %v2436_v49  ;;  %v1046_v49 = vmul.f32 %v1011_v28, %v2442_v50 }
 0x21b   :  { %1509 = vperm.xlu1 %2077, %v1035_v61  }
 0x21c   :  { %v2921_v36 = vpop.permute.xlu1 %1076  ;;  %v2923_v11 = vpop.permute.xlu0 %1081 }
 0x21e   :  { %1403 = vperm.xlu0 %2074, %v2840_v25   ;;  %v2943_v25 = vsub.s32 0, %v2931_v19 }
 0x21f   :  { %1514 = vperm.xlu1 %2077, %v1036_v12  }
 0x220   :  { %v2927_v15 = vpop.permute.xlu1 %1086  ;;  %v2929_v16 = vpop.permute.xlu0 %1091  ;;  %v2949_v44 = vrot.slane %v2936_v32, %v2943_v25  ;;  %v2981_v61 = vrot.slane %v2966_v35, %v2943_v25 }
 0x222   :  { %1411 = vperm.xlu0 %2074, %v2845_v13   ;;  %v1139_v41 = vmin.f32 %v2905_v18, %v2949_v44  ;;  %v1619_v12 = vmax.f32 %v2905_v18, %v2949_v44  ;;  %v1142_v31 = vmin.f32 %v2921_v36, %v2949_v44  ;;  %v1145_v58 = vmin.f32 %v2929_v16, %v2949_v44 }
 0x223   :  { %1524 = vperm.xlu1 %2077, %v1038_v63   ;;  %v1620_v63 = vmax.f32 %v2909_v9, %v2949_v44 }
 0x224   :  { %v2938_v39 = vpop.permute.xlu1 %1096  ;;  %v2940_v42 = vpop.permute.xlu0 %1101 }
 0x226   :  { %1419 = vperm.xlu0 %2074, %v2850_v62  }
 0x227   :  { %1534 = vperm.xlu1 %2077, %v1040_v29  }
 0x228   :  { %v2951_v13 = vpop.permute.xlu1 %1106  ;;  %v2953_v47 = vpop.permute.xlu0 %1111 }
 0x22a   :  { %1427 = vperm.xlu0 %2074, %v2855_v21  }
 0x22b   :  { %1544 = vperm.xlu1 %2077, %v1042_v38  }
 0x22c   :  { %v2961_v46 = vpop.permute.xlu1 %1116  ;;  %v2963_v62 = vpop.permute.xlu0 %1121 }
 0x22d   :  { %v1150_v0 = vmin.f32 %v2961_v46, %v2949_v44 }
 0x22e   :  { %2076 = vset.pattern.permute.xlu0 %v4000_v37 }
 0x22f   :  { %621 = vperm.xlu0 %2076, %v2455_v53   ;;  %1554 = vperm.xlu1 %2077, %v1044_v10  }
 0x230   :  { %v2975_v21 = vpop.permute.xlu1 %1126  ;;  %v2977_v59 = vpop.permute.xlu0 %1131 }
 0x231   :  { %v1632_v33 = vmax.f32 %v2975_v21, %v2949_v44 }
 0x233   :  { %633 = vperm.xlu0 %2076, %v2400_v43   ;;  %1564 = vperm.xlu1 %2077, %v1046_v49   ;;  %v1140_v43 = vmin.f32 %v2909_v9, %v2949_v44  ;;  %v1622_v9 = vmax.f32 %v2921_v36, %v2949_v44  ;;  %v1623_v36 = vmax.f32 %v2923_v11, %v2949_v44 }
 0x234   :  { %v2989_v53 = vpop.permute.xlu1 %1156  ;;  %v1162_v37 = vpop.permute.xlu0 %1161 }
 0x235   :  { %v1239_v50 = vmax.f32 %v1162_v37, %v2981_v61  ;;  %v1635_v28 = vmin.f32 %v1162_v37, %v2981_v61 }
 0x237   :  { %v3003_v29 = vsub.f32 %v1139_v41, %v1239_v50  ;;  %v3005_v38 = vsub.f32 %v1619_v12, %v1635_v28  ;;  %641 = vperm.xlu0 %2076, %v2412_v45   ;;  %1574 = vperm.xlu1 %2077, %v1048_v4   ;;  %v3023_v45 = vld [vmem:[%s3900_s1 + $0x38] sm:$0xff] }
 0x238   :  { %v1167_v18 = vpop.permute.xlu1 %1166  ;;  %v3008_v10 = vpop.permute.xlu0 %1171 }
 0x239   :  { %v1240_v49 = vmax.f32 %v1167_v18, %v2981_v61  ;;  %v1636_v52 = vmin.f32 %v1167_v18, %v2981_v61  ;;  %v1624_v18 = vmax.f32 %v2927_v15, %v2949_v44 }
 0x23b   :  { %v3016_v37 = vsub.f32 %v1140_v43, %v1240_v49  ;;  %v3018_v41 = vsub.f32 %v1620_v63, %v1636_v52  ;;  %649 = vperm.xlu0 %2076, %v3023_v45   ;;  %v1144_v63 = vmin.f32 %v2927_v15, %v2949_v44  ;;  %v1625_v15 = vmax.f32 %v2929_v16, %v2949_v44 }
 0x23c   :  { %v1177_v12 = vpop.permute.xlu1 %1176  ;;  %v3026_v50 = vpop.permute.xlu0 %1181 }
 0x23d   :  { %4001 = vst [vmem:[#allocation76_spill] sm:$0xff] %v3018_v41  ;;  %v1242_v28 = vmax.f32 %v1177_v12, %v2981_v61  ;;  %v1638_v4 = vmin.f32 %v1177_v12, %v2981_v61  ;;  %v1639_v43 = vmin.f32 %v3026_v50, %v2981_v61 }
 0x23f   :  { %v3038_v49 = vsub.f32 %v1142_v31, %v1242_v28  ;;  %v3040_v52 = vsub.f32 %v1622_v9, %v1638_v4  ;;  %657 = vperm.xlu0 %2076, %v2466_v55   ;;  %v3043_v23 = vsub.f32 %v1623_v36, %v1639_v43  ;;  %v1146_v55 = vmin.f32 %v2938_v39, %v2949_v44  ;;  %v3064_v43 = vld [vmem:[%s3900_s1 + $0x58] sm:$0xff] }
 0x240   :  { %v1187_v12 = vpop.permute.xlu1 %1186  ;;  %v1192_v40 = vpop.permute.xlu0 %1191  ;;  %v1626_v28 = vmax.f32 %v2938_v39, %v2949_v44  ;;  %v1147_v39 = vmin.f32 %v2940_v42, %v2949_v44 }
 0x241   :  { %4002 = vst [vmem:[#allocation77_spill] sm:$0xff] %v3040_v52  ;;  %v1244_v27 = vmax.f32 %v1187_v12, %v2981_v61  ;;  %v1640_v48 = vmin.f32 %v1187_v12, %v2981_v61  ;;  %v1245_v31 = vmax.f32 %v1192_v40, %v2981_v61  ;;  %v1641_v9 = vmin.f32 %v1192_v40, %v2981_v61 }
 0x243   :  { %v3057_v4 = vsub.f32 %v1144_v63, %v1244_v27  ;;  %v3059_v36 = vsub.f32 %v1624_v18, %v1640_v48  ;;  %665 = vperm.xlu0 %2076, %v3064_v43   ;;  %v3067_v16 = vsub.f32 %v1145_v58, %v1245_v31  ;;  %v3069_v40 = vsub.f32 %v1625_v15, %v1641_v9 }
 0x244   :  { %v1197_v12 = vpop.permute.xlu1 %1196  ;;  %v1202_v56 = vpop.permute.xlu0 %1201  ;;  %v1627_v18 = vmax.f32 %v2940_v42, %v2949_v44  ;;  %v1148_v58 = vmin.f32 %v2951_v13, %v2949_v44  ;;  %v1628_v31 = vmax.f32 %v2951_v13, %v2949_v44 }
 0x245   :  { %4003 = vst [vmem:[#allocation78_spill] sm:$0xff] %v3059_v36  ;;  %4004 = vst [vmem:[#allocation79_spill] sm:$0xff] %v3067_v16  ;;  %v1246_v27 = vmax.f32 %v1197_v12, %v2981_v61  ;;  %v1642_v48 = vmin.f32 %v1197_v12, %v2981_v61  ;;  %v1247_v63 = vmax.f32 %v1202_v56, %v2981_v61  ;;  %v3092_v12 = vld [vmem:[%s3900_s1 + $0x68] sm:$0xff] }
 0x246   :  { %4005 = vst [vmem:[#allocation80_spill] sm:$0xff] %v3069_v40  ;;  %v1643_v15 = vmin.f32 %v1202_v56, %v2981_v61  ;;  %v4045_v16 = vld [vmem:[#allocation30_spill] sm:$0xff] }
 0x247   :  { %v3083_v9 = vsub.f32 %v1146_v55, %v1246_v27  ;;  %v3085_v36 = vsub.f32 %v1626_v28, %v1642_v48  ;;  %v3087_v52 = vsub.f32 %v1147_v39, %v1247_v63  ;;  %673 = vperm.xlu0 %2076, %v3092_v12   ;;  %v3100_v55 = vsub.s32 1, %v2931_v19 }
 0x248   :  { %v3095_v42 = vsub.f32 %v1627_v18, %v1643_v15  ;;  %v1207_v41 = vpop.permute.xlu1 %1206  ;;  %v1212_v56 = vpop.permute.xlu0 %1211  ;;  %v3113_v18 = vld [vmem:[%s3900_s1 + $0x78] sm:$0xff] }
 0x249   :  { %4006 = vst [vmem:[#allocation81_spill] sm:$0xff] %v3083_v9  ;;  %4007 = vst [vmem:[#allocation82_spill] sm:$0xff] %v3085_v36  ;;  %v1248_v40 = vmax.f32 %v1207_v41, %v2981_v61  ;;  %v1644_v13 = vmin.f32 %v1207_v41, %v2981_v61  ;;  %v1249_v28 = vmax.f32 %v1212_v56, %v2981_v61  ;;  %v2178_v41 = vld [vmem:[%s3900_s1] sm:$0xff] }
 0x24a   :  { %4008 = vst [vmem:[#allocation83_spill] sm:$0xff] %v3087_v52  ;;  %4009 = vst [vmem:[#allocation84_spill] sm:$0xff] %v3095_v42  ;;  %v1645_v39 = vmin.f32 %v1212_v56, %v2981_v61  ;;  %v1034_v15 = vmul.f32 %v2178_v41, %v2870_v57  ;;  %v4035_v42 = vld [vmem:[#allocation35_spill] sm:$0xff] }
 0x24b   :  { %v3106_v48 = vsub.f32 %v1148_v58, %v1248_v40  ;;  %v3108_v63 = vsub.f32 %v1628_v31, %v1644_v13  ;;  %681 = vperm.xlu0 %2076, %v3113_v18   ;;  %v4012_v40 = vmin.f32 %v2953_v47, %v2949_v44  ;;  %v4014_v31 = vmax.f32 %v2953_v47, %v2949_v44 }
 0x24c   :  { %v1217_v13 = vpop.permute.xlu1 %1216  ;;  %v1222_v27 = vpop.permute.xlu0 %1221  ;;  %v3143_v47 = vrot.slane %v2916_v7, %v3100_v55 }
 0x24d   :  { %4010 = vst [vmem:[#allocation85_spill] sm:$0xff] %v3106_v48  ;;  %4011 = vst [vmem:[#allocation86_spill] sm:$0xff] %v3108_v63  ;;  %v3125_v58 = vsub.f32 %v4012_v40, %v1249_v28  ;;  %v3130_v56 = vsub.f32 %v4014_v31, %v1645_v39  ;;  %v1630_v63 = vmax.f32 %v2961_v46, %v2949_v44  ;;  %v4016_v46 = vsub.s32 2, %v2931_v19 }
 0x24e   :  { %v1250_v57 = vmax.f32 %v1217_v13, %v2981_v61  ;;  %v1646_v41 = vmin.f32 %v1217_v13, %v2981_v61  ;;  %v1251_v36 = vmax.f32 %v1222_v27, %v2981_v61  ;;  %v3139_v28 = vrot.slane %v2916_v7, %v2943_v25 }
 0x24f   :  { %4013 = vst [vmem:[#allocation87_spill] sm:$0xff] %v3125_v58  ;;  %4015 = vst [vmem:[#allocation88_spill] sm:$0xff] %v3130_v56  ;;  %v1647_v39 = vmin.f32 %v1222_v27, %v2981_v61  ;;  %v3150_v40 = vrot.slane %v2916_v7, %v4016_v46  ;;  %v4020_v25 = vmin.f32 %v2963_v62, %v2949_v44  ;;  %1504 = vperm.xlu0 %2076, %v1034_v15   ;;  %v2179_v27 = vld [vmem:[%s3900_s1 + $0x18] sm:$0xff] }
 0x250   :  { %v3152_v31 = vsub.f32 %v1150_v0, %v1250_v57  ;;  %v3154_v13 = vsub.f32 %v1630_v63, %v1646_v41  ;;  %v1037_v46 = vmul.f32 %v2179_v27, %v2876_v51  ;;  %v4022_v63 = vmax.f32 %v2963_v62, %v2949_v44  ;;  %v1227_v57 = vpop.permute.xlu1 %1226  ;;  %v1232_v41 = vpop.permute.xlu0 %1231 }
 0x251   :  { %4017 = vst [vmem:[#allocation89_spill] sm:$0xff] %v3150_v40  ;;  %v3159_v56 = vsub.f32 %v4020_v25, %v1251_v36  ;;  %v1152_v36 = vmin.f32 %v2975_v21, %v2949_v44  ;;  %v1252_v15 = vmax.f32 %v1227_v57, %v2981_v61  ;;  %v1648_v25 = vmin.f32 %v1227_v57, %v2981_v61 }
 0x252   :  { %4018 = vst [vmem:[#allocation90_spill] sm:$0xff] %v3152_v31  ;;  %4019 = vst [vmem:[#allocation91_spill] sm:$0xff] %v3154_v13  ;;  %v3170_v0 = vsub.f32 %v4022_v63, %v1647_v39  ;;  %v473_v51 = vsub.f32 %v2505_v24, %v3139_v28  ;;  %v1253_v62 = vmax.f32 %v1232_v41, %v2981_v61 }
 0x253   :  { %4021 = vst [vmem:[#allocation92_spill] sm:$0xff] %v3159_v56  ;;  %v1649_v39 = vmin.f32 %v1232_v41, %v2981_v61  ;;  %v476_v27 = vsub.f32 %v2511_v30, %v3139_v28  ;;  %v478_v63 = vsub.f32 %v2517_v34, %v3139_v28  ;;  %v3187_v21 = vsub.f32 %v1152_v36, %v1252_v15  ;;  %v2111_v36 = vpop.eup %2110  ;;  %v4038_v56 = vld [vmem:[#allocation52_spill] sm:$0xff] }
 0x254   :  { %4023 = vst [vmem:[#allocation93_spill] sm:$0xff] %v3170_v0  ;;  %v3189_v13 = vsub.f32 %v1632_v33, %v1648_v25  ;;  %1519 = vperm.xlu0 %2076, %v1037_v46   ;;  %v480_v24 = vsub.f32 %v2527_v5, %v3139_v28  ;;  %v4026_v57 = vmin.f32 %v2977_v59, %v2949_v44  ;;  %v2180_v5 = vld [vmem:[%s3900_s1 + $0x28] sm:$0xff]  ;;  %v489_v25 = vand.u32 2147483647, %v473_v51  ;;  %v2113_v51 = vpop.eup %2112 }
 0x255   :  { %4024 = vst [vmem:[#allocation94_spill] sm:$0xff] %v3187_v21  ;;  %v4028_v30 = vmax.f32 %v2977_v59, %v2949_v44  ;;  %v689_v46 = vsub.f32 %v2615_v20, %v3150_v40  ;;  %v1039_v1 = vmul.f32 %v2180_v5, %v2880_v60  ;;  %v3212_v33 = vpop.permute.xlu1 %1287  ;;  %v510_v15 = vpop.permute.xlu0 %509  ;;  %v3218_v59 = vrot.slane %v2936_v32, %v3100_v55  ;;  %v4032_v60 = vld [vmem:[#allocation9_spill] sm:$0xff] }
 0x256   :  { %4025 = vst [vmem:[#allocation95_spill] sm:$0xff] %v3189_v13  ;;  %v3199_v41 = vsub.f32 %v4026_v57, %v1253_v62  ;;  %4030 = vst [vmem:[#allocation98_spill] sm:$0xff] %v3212_v33  ;;  %v492_v20 = vand.u32 2147483647, %v476_v27  ;;  %v3221_v57 = vand.u32 2147483647, %v478_v63  ;;  %v484_v5 = vsub.f32 %v4032_v60, %v3139_v28 }
 0x257   :  { %v3204_v34 = vsub.f32 %v4028_v30, %v1649_v39  ;;  %v573_v39 = vsub.f32 %v510_v15, %v3143_v47  ;;  %v4031_v30 = vld [vmem:[#allocation8_spill] sm:$0xff]  ;;  %v3227_v21 = vand.u32 2147483647, %v480_v24  ;;  %v324_v32 = vmul.f32 -1.0, %v2111_v36  ;;  %v4034_v15 = vld [vmem:[#allocation10_spill] sm:$0xff]  ;;  %v2115_v24 = vpop.eup %2114 }
 0x258   :  { %4027 = vst [vmem:[#allocation96_spill] sm:$0xff] %v3199_v41  ;;  %v482_v13 = vsub.f32 %v4031_v30, %v3139_v28  ;;  %1529 = vperm.xlu0 %2076, %v1039_v1   ;;  %v4033_v62 = vld [vmem:[#allocation32_spill] sm:$0xff]  ;;  %v486_v27 = vsub.f32 %v4034_v15, %v3139_v28  ;;  %v705_v63 = vand.u32 2147483647, %v689_v46  ;;  %v692_v33 = vsub.f32 %v4035_v42, %v3150_v40  ;;  %v4037_v41 = vld [vmem:[#allocation25_spill] sm:$0xff]  ;;  %v4039_v15 = vld [vmem:[#allocation7_spill] sm:$0xff] }
 0x259   :  { %4029 = vst [vmem:[#allocation97_spill] sm:$0xff] %v3204_v34  ;;  %v805_v34 = vsub.f32 %v4033_v62, %v3194_v26  ;;  %v589_v0 = vand.u32 2147483647, %v573_v39  ;;  %v1041_v30 = vmul.f32 %v3023_v45, %v2884_v14  ;;  %v3237_v60 = vpop.permute.xlu1 %1295  ;;  %v522_v1 = vpop.permute.xlu0 %521  ;;  %2118 = vrcp.f32 %v4037_v41 }
 0x25a   :  { %4036 = vst [vmem:[#allocation8_spill] sm:$0xff] %v3237_v60  ;;  %v340_v62 = vmul.f32 %v4038_v56, %v324_v32  ;;  %v576_v39 = vsub.f32 %v522_v1, %v3143_v47  ;;  %v3244_v31 = vand.u32 2147483647, %v482_v13  ;;  %v3246_v42 = vand.u32 2147483647, %v484_v5  ;;  %v2117_v14 = vpop.eup %2116  ;;  %v4040_v60 = vld [vmem:[#allocation34_spill] sm:$0xff] }
 0x25b   :  { %v605_v36 = vadd.f32 %v589_v0, %v489_v25  ;;  %v327_v58 = vmul.f32 -1.0, %v2113_v51  ;;  %v821_v45 = vand.u32 2147483647, %v805_v34  ;;  %v808_v48 = vsub.f32 %v4040_v60, %v3194_v26  ;;  %v2181_v13 = vld [vmem:[%s3900_s1 + $0x48] sm:$0xff]  ;;  %v4041_v34 = vld [vmem:[#allocation61_spill] sm:$0xff]  ;;  %s2212_s1 = smov [#allocation2]  }
 0x25c   :  { %1539 = vperm.xlu0 %2076, %v1041_v30   ;;  %v592_v52 = vand.u32 2147483647, %v576_v39  ;;  %v3250_v56 = vand.u32 2147483647, %v486_v27  ;;  %v708_v0 = vand.u32 2147483647, %v692_v33  ;;  %v1043_v5 = vmul.f32 %v2181_v13, %v2887_v2 }
 0x25d   :  { %v721_v41 = vadd.f32 %v705_v63, %v605_v36  ;;  %v329_v25 = vmul.f32 -1.0, %v2115_v24  ;;  %v3256_v32 = vpop.permute.xlu1 %1299  ;;  %v530_v51 = vpop.permute.xlu0 %529  ;;  %v356_v30 = vadd.f32 1.0, %v340_v62  ;;  %v343_v1 = vmul.f32 %v327_v58, %v4041_v34  ;;  %v4042_v63 = vld [vmem:[#allocation27_spill] sm:$0xff]  ;;  %v4043_v27 = vld [vmem:[#allocation37_spill] sm:$0xff]  ;;  %v4044_v2 = vld [vmem:[#allocation36_spill] sm:$0xff]  ;;  %s1911_s22 = sshll.u32 %s2212_s1, 4  ;;  %s1912_s22 = int_to_ptr.vmem [resolvable:$true] %s1911_s22 }
 0x25e   :  { %v608_v60 = vadd.f32 %v592_v52, %v492_v20  ;;  %2120 = vrcp.f32 %v4042_v63  ;;  %v694_v33 = vsub.f32 %v4043_v27, %v3150_v40  ;;  %v331_v24 = vmul.f32 -1.0, %v2117_v14  ;;  %v4046_v52 = vld [vmem:[#allocation39_spill] sm:$0xff]  ;;  %v4048_v34 = vld [vmem:[#allocation64_spill] sm:$0xff]  ;;  %v4049_v27 = vld [vmem:[#allocation41_spill] sm:$0xff]  ;;  %s2182_s0 = scalar_lea.vmem %s1912_s22, 2048  ;;  %p2187_p1 = scmp.lt.s32.totalorder %s1912_s22, %s1912_s22 }
 0x25f   :  { %v837_v46 = vadd.f32 %v821_v45, %v721_v41  ;;  %v578_v36 = vsub.f32 %v530_v51, %v3143_v47  ;;  %v824_v39 = vand.u32 2147483647, %v808_v48  ;;  %v810_v13 = vsub.f32 %v4044_v2, %v3194_v26  ;;  %p2183_p0 = scmp.ne.s32.totalorder %s1912_s22, %s2182_s0  ;;  %p2188_p2 = scmp.lt.s32.totalorder %s2182_s0, %s2182_s0 }
 0x260   :  { %1549 = vperm.xlu0 %2076, %v1043_v5   ;;  %v724_v62 = vadd.f32 %v708_v0, %v608_v60  ;;  %2122 = vrcp.f32 %v4045_v16  ;;  %v696_v58 = vsub.f32 %v4046_v52, %v3150_v40  ;;  %v1045_v20 = vmul.f32 %v3064_v43, %v2891_v54  ;;  %v4047_v16 = vld [vmem:[#allocation38_spill] sm:$0xff] }
 0x261   :  { %v3265_v9 = vadd.f32 %v837_v46, %v356_v30  ;;  %v594_v45 = vand.u32 2147483647, %v578_v36  ;;  %v3272_v14 = vpop.permute.xlu1 %1307  ;;  %v538_v41 = vpop.permute.xlu0 %537  ;;  %v359_v5 = vadd.f32 1.0, %v343_v1  ;;  %v710_v0 = vand.u32 2147483647, %v694_v33  ;;  %p2189_p3 = por %p2188_p2, %p2187_p1 }
 0x262   :  { %v840_v48 = vadd.f32 %v824_v39, %v724_v62  ;;  %v580_v46 = vsub.f32 %v538_v41, %v3143_v47  ;;  %v812_v30 = vsub.f32 %v4047_v16, %v3194_v26  ;;  %v345_v60 = vmul.f32 %v329_v25, %v4048_v34  ;;  %v4051_v62 = vld [vmem:[#allocation66_spill] sm:$0xff] }
 0x263   :  { %v610_v63 = vadd.f32 %v594_v45, %v3221_v57  ;;  %v2119_v54 = vpop.eup %2118  ;;  %v826_v43 = vand.u32 2147483647, %v810_v13  ;;  %v698_v1 = vsub.f32 %v4049_v27, %v3150_v40  ;;  %v712_v2 = vand.u32 2147483647, %v696_v58  ;;  %v4053_v27 = vld [vmem:[#allocation69_spill] sm:$0xff]  ;;  %p2190_p4 = pnand %p2189_p3, %p2183_p0 }
 0x264   :  { %1559 = vperm.xlu0 %2076, %v1045_v20   ;;  %v3283_v36 = vadd.f32 %v840_v48, %v359_v5  ;;  %v596_v39 = vand.u32 2147483647, %v580_v46  ;;  %v347_v52 = vmul.f32 %v331_v24, %v4051_v62  ;;  %v1047_v33 = vmul.f32 %v3092_v12, %v2894_v8  ;;  %v4052_v8 = vld [vmem:[#allocation40_spill] sm:$0xff] }
 0x265   :  { %v726_v41 = vadd.f32 %v710_v0, %v610_v63  ;;  %v3288_v16 = vpop.permute.xlu1 %1315  ;;  %v546_v25 = vpop.permute.xlu0 %545  ;;  %v828_v58 = vand.u32 2147483647, %v812_v30  ;;  %v361_v5 = vadd.f32 1.0, %v345_v60  ;;  %v333_v24 = vmul.f32 -1.0, %v2119_v54 }
 0x266   :  { %4050 = vst [vmem:[#allocation9_spill] sm:$0xff] %v3283_v36  ;;  %v612_v57 = vadd.f32 %v596_v39, %v3227_v21  ;;  %v582_v45 = vsub.f32 %v546_v25, %v3143_v47  ;;  %v814_v12 = vsub.f32 %v4052_v8, %v3194_v26  ;;  %v714_v46 = vand.u32 2147483647, %v698_v1  ;;  %v4056_v25 = vld [vmem:[#allocation21_spill] sm:$0xff] }
 0x267   :  { %v842_v48 = vadd.f32 %v826_v43, %v726_v41  ;;  %v363_v63 = vadd.f32 1.0, %v347_v52  ;;  %v349_v39 = vmul.f32 %v333_v24, %v4053_v27  ;;  %v1049_v62 = vmul.f32 %v3113_v18, %v2900_v17  ;;  %v4057_v17 = vld [vmem:[#allocation43_spill] sm:$0xff]  ;;  %v4059_v24 = vld [vmem:[#allocation42_spill] sm:$0xff]  ;;  %v4060_v8 = vld [vmem:[#allocation45_spill] sm:$0xff] }
 0x268   :  { %1569 = vperm.xlu0 %2076, %v1047_v33   ;;  %v728_v0 = vadd.f32 %v712_v2, %v612_v57  ;;  %v598_v34 = vand.u32 2147483647, %v582_v45  ;;  %v2121_v21 = vpop.eup %2120  ;;  %v4055_v33 = vld [vmem:[#allocation12_spill] sm:$0xff]  ;;  %2124 = vrcp.f32 %v4056_v25  ;;  %v700_v18 = vsub.f32 %v4057_v17, %v3150_v40 }
 0x269   :  { %v3301_v20 = vadd.f32 %v842_v48, %v361_v5  ;;  %v3303_v30 = vpop.permute.xlu1 %1323  ;;  %v554_v60 = vpop.permute.xlu0 %553  ;;  %v574_v41 = vsub.f32 %v4055_v33, %v3143_v47  ;;  %v830_v45 = vand.u32 2147483647, %v814_v12  ;;  %v816_v48 = vsub.f32 %v4059_v24, %v3194_v26 }
 0x26a   :  { %v844_v54 = vadd.f32 %v828_v58, %v728_v0  ;;  %v614_v43 = vadd.f32 %v598_v34, %v3244_v31  ;;  %v2123_v52 = vpop.eup %2122  ;;  %v584_v57 = vsub.f32 %v554_v60, %v3143_v47  ;;  %v335_v31 = vmul.f32 -1.0, %v2121_v21  ;;  %v4061_v21 = vld [vmem:[#allocation15_spill] sm:$0xff] }
 0x26b   :  { %4054 = vst [vmem:[#allocation32_spill] sm:$0xff] %v3301_v20  ;;  %v702_v0 = vsub.f32 %v4060_v8, %v3150_v40  ;;  %v365_v34 = vadd.f32 1.0, %v349_v39  ;;  %v716_v60 = vand.u32 2147483647, %v700_v18  ;;  %v832_v2 = vand.u32 2147483647, %v816_v48 }
 0x26c   :  { %1579 = vperm.xlu0 %2076, %v1049_v62   ;;  %v3316_v58 = vadd.f32 %v844_v54, %v363_v63  ;;  %v730_v5 = vadd.f32 %v714_v46, %v614_v43  ;;  %v600_v27 = vand.u32 2147483647, %v584_v57  ;;  %v579_v63 = vsub.f32 %v4061_v21, %v3143_v47  ;;  %v4062_v54 = vld [vmem:[#allocation72_spill] sm:$0xff]  ;;  %v4065_v21 = vld [vmem:[#allocation75_spill] sm:$0xff] }
 0x26d   :  { %v3322_v33 = vpop.permute.xlu1 %1331  ;;  %v562_v25 = vpop.permute.xlu0 %561  ;;  %v351_v43 = vmul.f32 %v335_v31, %v4062_v54  ;;  %v4063_v57 = vld [vmem:[#allocation44_spill] sm:$0xff]  ;;  %v590_v62 = vand.u32 2147483647, %v574_v41  ;;  %v718_v12 = vand.u32 2147483647, %v702_v0 }
 0x26e   :  { %4058 = vst [vmem:[#allocation10_spill] sm:$0xff] %v3316_v58  ;;  %v846_v17 = vadd.f32 %v830_v45, %v730_v5  ;;  %v586_v46 = vsub.f32 %v562_v25, %v3143_v47  ;;  %v616_v39 = vadd.f32 %v600_v27, %v3246_v42  ;;  %v818_v24 = vsub.f32 %v4063_v57, %v3194_v26  ;;  %v4066_v27 = vld [vmem:[#allocation16_spill] sm:$0xff] }
 0x26f   :  { %v337_v45 = vmul.f32 -1.0, %v2123_v52  ;;  %v581_v41 = vsub.f32 %v4066_v27, %v3143_v47  ;;  %v367_v48 = vadd.f32 1.0, %v351_v43  ;;  %v1357_v52 = vmin.f32 %v3256_v32, %v3218_v59 }
 0x270   :  { %v3335_v5 = vadd.f32 %v846_v17, %v365_v34  ;;  %v602_v8 = vand.u32 2147483647, %v586_v46  ;;  %v732_v1 = vadd.f32 %v716_v60, %v616_v39  ;;  %v595_v34 = vand.u32 2147483647, %v579_v63  ;;  %v4067_v17 = vld [vmem:[#allocation17_spill] sm:$0xff]  ;;  %v4068_v60 = vld [vmem:[#allocation18_spill] sm:$0xff] }
 0x271   :  { %v3337_v25 = vpop.permute.xlu1 %1339  ;;  %v1292_v13 = vpop.permute.xlu0 %1291  ;;  %v353_v18 = vmul.f32 %v337_v45, %v4065_v21  ;;  %v583_v46 = vsub.f32 %v4067_v17, %v3143_v47  ;;  %v585_v54 = vsub.f32 %v4068_v60, %v3143_v47  ;;  %v834_v39 = vand.u32 2147483647, %v818_v24 }
 0x272   :  { %4064 = vst [vmem:[#allocation35_spill] sm:$0xff] %v3335_v5  ;;  %v618_v31 = vadd.f32 %v602_v8, %v3250_v56  ;;  %v848_v0 = vadd.f32 %v832_v2, %v732_v1  ;;  %v2125_v57 = vpop.eup %2124  ;;  %v4069_v45 = vsub.f32 %v2507_v3, %v3139_v28  ;;  %v4070_v63 = vsub.f32 %v4039_v15, %v3139_v28 }
 0x273   :  { %v3359_v1 = vrot.slane %v2966_v35, %v3100_v55  ;;  %v3375_v35 = vand.u32 2147483647, %v581_v41  ;;  %v4074_v55 = vld [vmem:[#allocation24_spill] sm:$0xff]  ;;  %v1243_v3 = vmax.f32 %v3026_v50, %v2981_v61  ;;  %v1238_v50 = vmax.f32 %v2989_v53, %v2981_v61 }
 0x274   :  { %v734_v56 = vadd.f32 %v718_v12, %v618_v31  ;;  %v490_v8 = vand.u32 2147483647, %v4069_v45  ;;  %v495_v21 = vand.u32 2147483647, %v4070_v63  ;;  %v3361_v2 = vadd.f32 %v848_v0, %v367_v48  ;;  %v4080_v45 = vld [vmem:[#allocation28_spill] sm:$0xff] }
 0x275   :  { %v3363_v43 = vpop.permute.xlu1 %1347  ;;  %v3365_v27 = vpop.permute.xlu0 %1303  ;;  %v369_v12 = vadd.f32 1.0, %v353_v18  ;;  %4073 = vst [vmem:[#allocation7_spill] sm:$0xff] %v3375_v35  ;;  %2126 = vrcp.f32 %v4074_v55  ;;  %v3378_v48 = vand.u32 2147483647, %v583_v46  ;;  %v3380_v0 = vand.u32 2147483647, %v585_v54 }
 0x276   :  { %4071 = vst [vmem:[#allocation25_spill] sm:$0xff] %v3361_v2  ;;  %v850_v24 = vadd.f32 %v834_v39, %v734_v56  ;;  %v3371_v15 = vadd.f32 %v590_v62, %v490_v8  ;;  %v3373_v17 = vadd.f32 %v595_v34, %v495_v21  ;;  %v4077_v18 = vld [vmem:[#allocation26_spill] sm:$0xff]  ;;  %v4079_v39 = vld [vmem:[#allocation19_spill] sm:$0xff]  ;;  %v3388_v62 = vmul.f32 -1.0, %v2125_v57  ;;  %v4081_v46 = vld [vmem:[#allocation33_spill] sm:$0xff] }
 0x277   :  { %4075 = vst [vmem:[#allocation34_spill] sm:$0xff] %v3378_v48  ;;  %4076 = vst [vmem:[#allocation61_spill] sm:$0xff] %v3380_v0  ;;  %2128 = vrcp.f32 %v4077_v18  ;;  %v1241_v34 = vmax.f32 %v3008_v10, %v2981_v61  ;;  %v690_v54 = vsub.f32 %v4081_v46, %v3150_v40  ;;  %v1355_v63 = vmin.f32 %v1292_v13, %v3218_v59 }
 0x278   :  { %4072 = vst [vmem:[#allocation52_spill] sm:$0xff] %v3373_v17  ;;  %v3383_v60 = vadd.f32 %v850_v24, %v369_v12  ;;  %2130 = vrcp.f32 %v4080_v45  ;;  %v1138_v24 = vmin.f32 %v2903_v6, %v2949_v44  ;;  %v1141_v57 = vmin.f32 %v2911_v22, %v2949_v44 }
 0x279   :  { %v1376_v41 = vpop.permute.xlu1 %1375  ;;  %v3392_v8 = vpop.permute.xlu0 %1311  ;;  %v1667_v55 = vmax.f32 %v1292_v13, %v3218_v59  ;;  %v1051_v18 = vrot.slane %v2916_v7, 1  ;;  %v1621_v45 = vmax.f32 %v2911_v22, %v2949_v44  ;;  %v1271_v46 = vmax.f32 %v3003_v29, 0.0 }
 0x27a   :  { %4078 = vst [vmem:[#allocation27_spill] sm:$0xff] %v3383_v60  ;;  %v1439_v21 = vmax.f32 %v1376_v41, %v3359_v1  ;;  %v1683_v12 = vmin.f32 %v1376_v41, %v3359_v1  ;;  %v1637_v56 = vmin.f32 %v3008_v10, %v2981_v61  ;;  %v1257_v41 = vsub.f32 %v1141_v57, %v1241_v34 }
 0x27b   :  { %v1669_v22 = vmax.f32 %v3256_v32, %v3218_v59  ;;  %v1143_v34 = vmin.f32 %v2923_v11, %v2949_v44  ;;  %v1359_v11 = vmin.f32 %v3272_v14, %v3218_v59 }
 0x27c   :  { %v1455_v31 = vsub.f32 %v1355_v63, %v1439_v21  ;;  %v1699_v42 = vsub.f32 %v1667_v55, %v1683_v12  ;;  %v1634_v63 = vmin.f32 %v2989_v53, %v2981_v61  ;;  %v1053_v21 = vmul.f32 %v1051_v18, %v2916_v7 }
 0x27d   :  { %v1384_v13 = vpop.permute.xlu1 %1383  ;;  %v3414_v51 = vpop.permute.xlu0 %1319  ;;  %v1653_v12 = vsub.f32 %v1621_v45, %v1637_v56  ;;  %v1273_v2 = vmax.f32 %v1257_v41, 0.0  ;;  %v3455_v45 = vand.u32 2147483647, %v690_v54  ;;  %v4084_v41 = vmax.f32 %v3272_v14, %v3218_v59 }
 0x27e   :  { %v1471_v60 = vmax.f32 %v1455_v31, 0.0  ;;  %v1441_v29 = vmax.f32 %v1384_v13, %v3359_v1  ;;  %v1685_v10 = vmin.f32 %v1384_v13, %v3359_v1  ;;  %v1259_v13 = vsub.f32 %v1143_v34, %v1243_v3  ;;  %v4083_v3 = vld [vmem:[#allocation29_spill] sm:$0xff] }
 0x27f   :  { %v3429_v31 = vpop.eup %2126  ;;  %v3434_v5 = vmul.f32 %v1699_v42, %v3005_v38  ;;  %2132 = vrcp.f32 %v4083_v3  ;;  %v1618_v38 = vmax.f32 %v2903_v6, %v2949_v44  ;;  %v3449_v42 = vsub.f32 %v1138_v24, %v1238_v50  ;;  %v4093_v3 = vld [vmem:[#allocation79_spill] sm:$0xff] }
 0x280   :  { %v1457_v57 = vsub.f32 %v1357_v52, %v1441_v29  ;;  %v1701_v55 = vsub.f32 %v1669_v22, %v1685_v10  ;;  %v3427_v32 = vmul.f32 %v1471_v60, %v1271_v46  ;;  %v4086_v29 = vld [vmem:[#allocation49_spill] sm:$0xff]  ;;  %v1275_v6 = vmax.f32 %v1259_v13, 0.0  ;;  %v4103_v10 = vld [vmem:[#allocation96_spill] sm:$0xff] }
 0x281   :  { %v1392_v0 = vpop.permute.xlu1 %1391  ;;  %v3436_v48 = vpop.permute.xlu0 %1327  ;;  %v3464_v34 = vsub.f32 %v1618_v38, %v1634_v63  ;;  %v4087_v50 = vsub.s32 2, %v2931_v19  ;;  %v1277_v38 = vmax.f32 %v4093_v3, 0.0  ;;  %v4101_v3 = vld [vmem:[#allocation92_spill] sm:$0xff] }
 0x282   :  { %v3438_v61 = vpop.eup %2128  ;;  %v1473_v7 = vmax.f32 %v1457_v57, 0.0  ;;  %v3440_v53 = vmul.f32 %v1701_v55, %v1653_v12  ;;  %v1443_v52 = vmax.f32 %v1392_v0, %v3359_v1  ;;  %v1687_v60 = vmin.f32 %v1392_v0, %v3359_v1  ;;  %v4097_v55 = vld [vmem:[#allocation80_spill] sm:$0xff] }
 0x283   :  { %v3444_v56 = vpop.eup %2130  ;;  %v3453_v18 = vmul.f32 %v3434_v5, %v3427_v32  ;;  %v3470_v54 = vrot.slane %v1053_v21, %v4087_v50  ;;  %v4096_v50 = vld [vmem:[#allocation85_spill] sm:$0xff] }
 0x284   :  { %4082 = vst [vmem:[#allocation37_spill] sm:$0xff] %v3440_v53  ;;  %v1459_v46 = vsub.f32 %v1359_v11, %v1443_v52  ;;  %v1703_v0 = vsub.f32 %v4084_v41, %v1687_v60  ;;  %v3460_v22 = vmul.f32 %v1473_v7, %v1273_v2  ;;  %v4091_v7 = vmax.f32 %v3288_v16, %v3218_v59 }
 0x285   :  { %v1400_v44 = vpop.permute.xlu1 %1399  ;;  %v3466_v24 = vpop.permute.xlu0 %1335 }
 0x286   :  { %4085 = vst [vmem:[#allocation36_spill] sm:$0xff] %v3460_v22  ;;  %v1475_v12 = vmax.f32 %v1459_v46, 0.0  ;;  %v3473_v57 = vmul.f32 %v1703_v0, %v3043_v23  ;;  %v1445_v14 = vmax.f32 %v1400_v44, %v3359_v1  ;;  %v1689_v2 = vmin.f32 %v1400_v44, %v3359_v1  ;;  %v4094_v46 = vld [vmem:[#allocation81_spill] sm:$0xff]  ;;  %v4095_v0 = vld [vmem:[#allocation83_spill] sm:$0xff] }
 0x287   :  { %v3482_v11 = vmul.f32 %v3440_v53, %v3460_v22  ;;  %v4090_v23 = vmin.f32 %v3288_v16, %v3218_v59  ;;  %v1279_v44 = vmax.f32 %v4095_v0, 0.0  ;;  %v1358_v22 = vmin.f32 %v3365_v27, %v3218_v59 }
 0x288   :  { %4088 = vst [vmem:[#allocation30_spill] sm:$0xff] %v3473_v57  ;;  %v1705_v52 = vsub.f32 %v4091_v7, %v1689_v2  ;;  %v3491_v60 = vmul.f32 %v1475_v12, %v1275_v6  ;;  %v4099_v12 = vld [vmem:[#allocation87_spill] sm:$0xff]  ;;  %v4108_v7 = vld [vmem:[#allocation98_spill] sm:$0xff] }
 0x289   :  { %4089 = vst [vmem:[#allocation39_spill] sm:$0xff] %v3482_v11  ;;  %v1461_v21 = vsub.f32 %v4090_v23, %v1445_v14  ;;  %v1408_v13 = vpop.permute.xlu1 %1407  ;;  %v3497_v19 = vpop.permute.xlu0 %1343  ;;  %v1281_v2 = vmax.f32 %v4099_v12, 0.0  ;;  %v4100_v23 = vld [vmem:[#allocation90_spill] sm:$0xff]  ;;  %v1354_v41 = vmin.f32 %v4108_v7, %v3218_v59  ;;  %v4109_v11 = vld [vmem:[#allocation8_spill] sm:$0xff] }
 0x28a   :  { %4092 = vst [vmem:[#allocation38_spill] sm:$0xff] %v3491_v60  ;;  %v3500_v14 = vmul.f32 %v1705_v52, %v4097_v55  ;;  %v1447_v16 = vmax.f32 %v1408_v13, %v3359_v1  ;;  %v1691_v6 = vmin.f32 %v1408_v13, %v3359_v1  ;;  %v3509_v0 = vmul.f32 %v3473_v57, %v3491_v60  ;;  %v3520_v12 = vpop.eup %2132 }
 0x28b   :  { %v1477_v63 = vmax.f32 %v1461_v21, 0.0  ;;  %v4104_v55 = vmin.f32 %v3303_v30, %v3218_v59  ;;  %v4105_v52 = vmax.f32 %v3303_v30, %v3218_v59  ;;  %4107 = vst [vmem:[#allocation40_spill] sm:$0xff] %v3520_v12  ;;  %v1356_v57 = vmin.f32 %v4109_v11, %v3218_v59  ;;  %v4114_v12 = vld [vmem:[#allocation88_spill] sm:$0xff] }
 0x28c   :  { %4098 = vst [vmem:[#allocation64_spill] sm:$0xff] %v3500_v14  ;;  %4102 = vst [vmem:[#allocation41_spill] sm:$0xff] %v3509_v0  ;;  %v1666_v0 = vmax.f32 %v4108_v7, %v3218_v59 }
 0x28d   :  { %v1463_v21 = vsub.f32 %v4104_v55, %v1447_v16  ;;  %v1707_v13 = vsub.f32 %v4105_v52, %v1691_v6  ;;  %v3518_v53 = vmul.f32 %v1477_v63, %v1277_v38  ;;  %v1668_v16 = vmax.f32 %v4109_v11, %v3218_v59  ;;  %v1416_v55 = vpop.permute.xlu1 %1415  ;;  %v1372_v60 = vpop.permute.xlu0 %1371  ;;  %v4110_v6 = vld [vmem:[#allocation84_spill] sm:$0xff] }
 0x28e   :  { %v1449_v38 = vmax.f32 %v1416_v55, %v3359_v1  ;;  %v1693_v52 = vmin.f32 %v1416_v55, %v3359_v1  ;;  %v1438_v7 = vmax.f32 %v1372_v60, %v3359_v1  ;;  %v1682_v58 = vmin.f32 %v1372_v60, %v3359_v1 }
 0x28f   :  { %4106 = vst [vmem:[#allocation66_spill] sm:$0xff] %v3518_v53  ;;  %v1479_v30 = vmax.f32 %v1463_v21, 0.0  ;;  %v3531_v63 = vmul.f32 %v1707_v13, %v4110_v6  ;;  %v3541_v11 = vmul.f32 %v3500_v14, %v3518_v53  ;;  %v1670_v21 = vmax.f32 %v3365_v27, %v3218_v59 }
 0x290   :  { %v4112_v13 = vmin.f32 %v3322_v33, %v3218_v59  ;;  %v4113_v55 = vmax.f32 %v3322_v33, %v3218_v59  ;;  %v1360_v60 = vmin.f32 %v3392_v8, %v3218_v59  ;;  %v1672_v14 = vmax.f32 %v3392_v8, %v3218_v59 }
 0x291   :  { %4111 = vst [vmem:[#allocation69_spill] sm:$0xff] %v3541_v11  ;;  %v3551_v17 = vmul.f32 %v1479_v30, %v1279_v44  ;;  %v1454_v11 = vsub.f32 %v1354_v41, %v1438_v7  ;;  %v1698_v53 = vsub.f32 %v1666_v0, %v1682_v58  ;;  %v1424_v36 = vpop.permute.xlu1 %1423  ;;  %v1380_v27 = vpop.permute.xlu0 %1379  ;;  %v4116_v58 = vmin.f32 %v3337_v25, %v3218_v59 }
 0x292   :  { %v1465_v6 = vsub.f32 %v4112_v13, %v1449_v38  ;;  %v1709_v20 = vsub.f32 %v4113_v55, %v1693_v52  ;;  %v1451_v38 = vmax.f32 %v1424_v36, %v3359_v1  ;;  %v1695_v33 = vmin.f32 %v1424_v36, %v3359_v1 }
 0x293   :  { %v1470_v44 = vmax.f32 %v1454_v11, 0.0  ;;  %v3563_v30 = vmul.f32 %v1698_v53, %v3464_v34  ;;  %v1440_v52 = vmax.f32 %v1380_v27, %v3359_v1  ;;  %v1684_v8 = vmin.f32 %v1380_v27, %v3359_v1 }
 0x294   :  { %v1481_v40 = vmax.f32 %v1465_v6, 0.0  ;;  %v3558_v35 = vmul.f32 %v1709_v20, %v4114_v12  ;;  %v1467_v41 = vsub.f32 %v4116_v58, %v1451_v38  ;;  %v4117_v20 = vmax.f32 %v3337_v25, %v3218_v59  ;;  %v4119_v25 = vld [vmem:[#allocation93_spill] sm:$0xff]  ;;  %v4120_v58 = vld [vmem:[#allocation76_spill] sm:$0xff] }
 0x295   :  { %v3575_v12 = vmul.f32 %v3531_v63, %v3551_v17  ;;  %v1362_v53 = vmin.f32 %v3414_v51, %v3218_v59  ;;  %v1456_v34 = vsub.f32 %v1356_v57, %v1440_v52  ;;  %v1700_v7 = vsub.f32 %v1668_v16, %v1684_v8  ;;  %v1432_v11 = vpop.permute.xlu1 %1431  ;;  %v1388_v13 = vpop.permute.xlu0 %1387 }
 0x296   :  { %4115 = vst [vmem:[#allocation12_spill] sm:$0xff] %v3558_v35  ;;  %v1711_v0 = vsub.f32 %v4117_v20, %v1695_v33  ;;  %v3577_v36 = vmul.f32 %v1481_v40, %v1281_v2  ;;  %v4118_v6 = vmax.f32 %v3449_v42, 0.0  ;;  %v1483_v27 = vmax.f32 %v1467_v41, 0.0 }
 0x297   :  { %v1453_v33 = vmax.f32 %v1432_v11, %v3359_v1  ;;  %v1697_v40 = vmin.f32 %v1432_v11, %v3359_v1  ;;  %v1472_v2 = vmax.f32 %v1456_v34, 0.0  ;;  %v1716_v20 = vmul.f32 %v1700_v7, %v4120_v58 }
 0x298   :  { %v3583_v55 = vmul.f32 %v1470_v44, %v4118_v6  ;;  %v3586_v38 = vmul.f32 %v1711_v0, %v4119_v25  ;;  %v1442_v57 = vmax.f32 %v1388_v13, %v3359_v1  ;;  %v1686_v16 = vmin.f32 %v1388_v13, %v3359_v1 }
 0x299   :  { %v4121_v42 = vmin.f32 %v3363_v43, %v3218_v59  ;;  %v4122_v52 = vmax.f32 %v3363_v43, %v3218_v59  ;;  %v3605_v0 = vmul.f32 %v3558_v35, %v3577_v36  ;;  %v1396_v11 = vpop.permute.xlu0 %1395  ;;  %v4123_v13 = vmax.f32 %v3016_v37, 0.0 }
 0x29a   :  { %v3601_v41 = vmul.f32 %v3563_v30, %v3583_v55  ;;  %v1458_v34 = vsub.f32 %v1358_v22, %v1442_v57  ;;  %v1702_v7 = vsub.f32 %v1670_v21, %v1686_v16  ;;  %v4124_v25 = vmax.f32 %v4101_v3, 0.0  ;;  %v1510_v35 = vpop.permute.xlu1 %1509 }
 0x29b   :  { %v1469_v44 = vsub.f32 %v4121_v42, %v1453_v33  ;;  %v1713_v8 = vsub.f32 %v4122_v52, %v1697_v40  ;;  %v1488_v6 = vmul.f32 %v1472_v2, %v4123_v13  ;;  %v4125_v40 = vld [vmem:[#allocation97_spill] sm:$0xff]  ;;  %v1444_v42 = vmax.f32 %v1396_v11, %v3359_v1 }
 0x29c   :  { %v3611_v33 = vmul.f32 %v1483_v27, %v4124_v25  ;;  %v1688_v52 = vmin.f32 %v1396_v11, %v3359_v1  ;;  %v1674_v22 = vmax.f32 %v3414_v51, %v3218_v59  ;;  %v1474_v21 = vmax.f32 %v1458_v34, 0.0 }
 0x29d   :  { %v1485_v43 = vmax.f32 %v1469_v44, 0.0  ;;  %v3614_v58 = vmul.f32 %v1713_v8, %v4125_v40  ;;  %v1587_v37 = vadd.f32 %v3470_v54, %v1510_v35  ;;  %v1812_v2 = vmul.f32 %v1716_v20, %v1488_v6  ;;  %v4129_v8 = vld [vmem:[#allocation77_spill] sm:$0xff]  ;;  %v1404_v34 = vpop.permute.xlu0 %1403 }
 0x29e   :  { %v1364_v3 = vmin.f32 %v3436_v48, %v3218_v59  ;;  %v1460_v27 = vsub.f32 %v1360_v60, %v1444_v42  ;;  %v3625_v57 = vmul.f32 %v3586_v38, %v3611_v33  ;;  %v4128_v16 = vmax.f32 %v4103_v10, 0.0  ;;  %v1515_v10 = vpop.permute.xlu1 %1514 }
 0x29f   :  { %4126 = vst [vmem:[#allocation21_spill] sm:$0xff] %v3614_v58  ;;  %v1718_v11 = vmul.f32 %v1702_v7, %v4129_v8  ;;  %v1704_v13 = vsub.f32 %v1672_v14, %v1688_v52  ;;  %v1603_v51 = vsub.f32 %v1587_v37, %v3427_v32  ;;  %v4130_v35 = vmax.f32 %v3038_v49, 0.0  ;;  %v4133_v37 = vld [vmem:[#allocation78_spill] sm:$0xff] }
 0x2a0   :  { %4127 = vst [vmem:[#allocation43_spill] sm:$0xff] %v3625_v57  ;;  %v3629_v44 = vmul.f32 %v1485_v43, %v4128_v16  ;;  %v1676_v60 = vmax.f32 %v3436_v48, %v3218_v59  ;;  %v1476_v40 = vmax.f32 %v1460_v27, 0.0  ;;  %v1446_v42 = vmax.f32 %v1404_v34, %v3359_v1 }
 0x2a1   :  { %v1490_v25 = vmul.f32 %v1474_v21, %v4130_v35  ;;  %v1690_v57 = vmin.f32 %v1404_v34, %v3359_v1  ;;  %v1731_v43 = vmul.f32 %v3434_v5, %v1603_v51  ;;  %v1827_v16 = vmul.f32 %v1603_v51, %v1603_v51  ;;  %v1412_v51 = vpop.permute.xlu0 %1411 }
 0x2a2   :  { %v1588_v14 = vadd.f32 %v3470_v54, %v1515_v10  ;;  %v1462_v32 = vsub.f32 %v1362_v53, %v1446_v42  ;;  %v4131_v49 = vmax.f32 %v3057_v4, 0.0  ;;  %v3645_v48 = vmul.f32 %v3614_v58, %v3629_v44  ;;  %v4134_v10 = vld [vmem:[#allocation82_spill] sm:$0xff] }
 0x2a3   :  { %v1814_v7 = vmul.f32 %v1718_v11, %v1490_v25  ;;  %v1706_v52 = vsub.f32 %v1674_v22, %v1690_v57  ;;  %v1720_v27 = vmul.f32 %v1704_v13, %v4133_v37  ;;  %2134 = vrcp.f32 %v1731_v43  ;;  %v1525_v57 = vpop.permute.xlu1 %1524 }
 0x2a4   :  { %v1492_v21 = vmul.f32 %v1476_v40, %v4131_v49  ;;  %4132 = vst [vmem:[#allocation42_spill] sm:$0xff] %v3645_v48  ;;  %v3649_v8 = vadd.f32 %v1827_v16, %v3453_v18  ;;  %v1604_v5 = vsub.f32 %v1588_v14, %v1488_v6  ;;  %v1366_v34 = vmin.f32 %v3466_v24, %v3218_v59 }
 0x2a5   :  { %v1478_v53 = vmax.f32 %v1462_v32, 0.0  ;;  %v1448_v22 = vmax.f32 %v1412_v51, %v3359_v1  ;;  %v1692_v4 = vmin.f32 %v1412_v51, %v3359_v1  ;;  %v1590_v42 = vadd.f32 %v3470_v54, %v1525_v57  ;;  %v1420_v48 = vpop.permute.xlu0 %1419 }
 0x2a6   :  { %v1732_v35 = vmul.f32 %v1716_v20, %v1604_v5  ;;  %v1828_v40 = vmul.f32 %v1604_v5, %v1604_v5  ;;  %v1816_v13 = vmul.f32 %v1720_v27, %v1492_v21  ;;  %v1678_v18 = vmax.f32 %v3466_v24, %v3218_v59 }
 0x2a7   :  { %v1722_v6 = vmul.f32 %v1706_v52, %v4134_v10  ;;  %v1464_v16 = vsub.f32 %v1364_v3, %v1448_v22  ;;  %v4135_v14 = vmax.f32 %v4094_v46, 0.0  ;;  %v1708_v37 = vsub.f32 %v1676_v60, %v1692_v4  ;;  %v1535_v58 = vpop.permute.xlu1 %1534 }
 0x2a8   :  { %2136 = vrcp.f32 %v1732_v35  ;;  %v3661_v32 = vadd.f32 %v1828_v40, %v1812_v2  ;;  %v1606_v51 = vsub.f32 %v1590_v42, %v1490_v25  ;;  %v1368_v20 = vmin.f32 %v3497_v19, %v3218_v59  ;;  %v4137_v40 = vld [vmem:[#allocation86_spill] sm:$0xff] }
 0x2a9   :  { %v1494_v49 = vmul.f32 %v1478_v53, %v4135_v14  ;;  %v1480_v5 = vmax.f32 %v1464_v16, 0.0  ;;  %v1450_v57 = vmax.f32 %v1420_v48, %v3359_v1  ;;  %v1694_v24 = vmin.f32 %v1420_v48, %v3359_v1  ;;  %v1428_v10 = vpop.permute.xlu0 %1427  ;;  %v4138_v14 = vld [vmem:[#allocation91_spill] sm:$0xff] }
 0x2aa   :  { %v3667_v52 = vmul.f32 %v1718_v11, %v1606_v51  ;;  %v1830_v3 = vmul.f32 %v1606_v51, %v1606_v51  ;;  %v1592_v46 = vadd.f32 %v3470_v54, %v1535_v58  ;;  %v1680_v2 = vmax.f32 %v3497_v19, %v3218_v59 }
 0x2ab   :  { %v1818_v53 = vmul.f32 %v1722_v6, %v1494_v49  ;;  %v1466_v25 = vsub.f32 %v1366_v34, %v1450_v57  ;;  %v1710_v60 = vsub.f32 %v1678_v18, %v1694_v24  ;;  %v4136_v22 = vmax.f32 %v4096_v50, 0.0  ;;  %v1545_v19 = vpop.permute.xlu1 %1544 }
 0x2ac   :  { %v1724_v42 = vmul.f32 %v1708_v37, %v4137_v40  ;;  %2138 = vrcp.f32 %v3667_v52  ;;  %v3676_v48 = vadd.f32 %v1830_v3, %v1814_v7  ;;  %v1608_v11 = vsub.f32 %v1592_v46, %v1492_v21  ;;  %v4140_v46 = vld [vmem:[#allocation57_spill] sm:$0xff] }
 0x2ad   :  { %v1496_v4 = vmul.f32 %v1480_v5, %v4136_v22  ;;  %v1482_v16 = vmax.f32 %v1466_v25, 0.0  ;;  %v3679_v58 = vmul.f32 %v1710_v60, %v4138_v14  ;;  %v1452_v51 = vmax.f32 %v1428_v10, %v3359_v1  ;;  %v2135_v34 = vpop.eup %2134 }
 0x2ae   :  { %v1696_v59 = vmin.f32 %v1428_v10, %v3359_v1  ;;  %v3683_v50 = vmul.f32 %v1720_v27, %v1608_v11  ;;  %v1832_v18 = vmul.f32 %v1608_v11, %v1608_v11  ;;  %v1594_v37 = vadd.f32 %v3470_v54, %v1545_v19  ;;  %v4141_v27 = vld [vmem:[#allocation94_spill] sm:$0xff]  ;;  %v3694_v14 = vpop.permute.xlu0 %621 }
 0x2af   :  { %v1820_v5 = vmul.f32 %v1724_v42, %v1496_v4  ;;  %v1763_v7 = vmul.f32 %v2135_v34, %v1731_v43  ;;  %v1468_v57 = vsub.f32 %v1368_v20, %v1452_v51  ;;  %v4139_v24 = vmax.f32 %v4100_v23, 0.0  ;;  %v1555_v10 = vpop.permute.xlu1 %1554 }
 0x2b0   :  { %v1712_v21 = vsub.f32 %v1680_v2, %v1696_v59  ;;  %v341_v25 = vmul.f32 %v3388_v62, %v4140_v46  ;;  %2140 = vrcp.f32 %v3683_v50  ;;  %v3691_v1 = vadd.f32 %v1832_v18, %v1816_v13  ;;  %v4143_v59 = vld [vmem:[#allocation95_spill] sm:$0xff] }
 0x2b1   :  { %v1498_v3 = vmul.f32 %v1482_v16, %v4139_v24  ;;  %v1610_v60 = vsub.f32 %v1594_v37, %v1494_v49  ;;  %v1284_v22 = vmax.f32 %v4141_v27, 0.0  ;;  %v1779_v40 = vsub.f32 2.0, %v1763_v7 }
 0x2b2   :  { %v1484_v11 = vmax.f32 %v1468_v57, 0.0  ;;  %v2137_v20 = vpop.eup %2136  ;;  %v4142_v23 = vsub.f32 %v4086_v29, %v3194_v26  ;;  %v1596_v13 = vadd.f32 %v3470_v54, %v1555_v10  ;;  %v1728_v19 = vmul.f32 %v1712_v21, %v4143_v59  ;;  %v4144_v21 = vld [vmem:[#allocation48_spill] sm:$0xff]  ;;  %v4146_v59 = vld [vmem:[#allocation31_spill] sm:$0xff] }
 0x2b3   :  { %v1822_v43 = vmul.f32 %v3679_v58, %v1498_v3  ;;  %v3700_v62 = vmul.f32 %v1722_v6, %v1610_v60  ;;  %v1834_v16 = vmul.f32 %v1610_v60, %v1610_v60  ;;  %v1795_v49 = vmul.f32 %v2135_v34, %v1779_v40  ;;  %v1565_v46 = vpop.permute.xlu1 %1564  ;;  %v3710_v60 = vpop.permute.xlu0 %633 }
 0x2b4   :  { %v822_v2 = vand.u32 2147483647, %v4142_v23  ;;  %v1764_v51 = vmul.f32 %v2137_v20, %v1732_v35  ;;  %v1500_v18 = vmul.f32 %v1484_v11, %v1284_v22  ;;  %v722_v37 = vadd.f32 %v3455_v45, %v3371_v15 }
 0x2b5   :  { %2142 = vrcp.f32 %v3700_v62  ;;  %v3707_v7 = vadd.f32 %v1834_v16, %v1818_v53  ;;  %v1612_v57 = vsub.f32 %v1596_v13, %v1496_v4  ;;  %v357_v29 = vadd.f32 1.0, %v341_v25 }
 0x2b6   :  { %v1859_v6 = vmul.f32 %v3649_v8, %v1795_v49  ;;  %v1780_v24 = vsub.f32 2.0, %v1764_v51  ;;  %v1824_v34 = vmul.f32 %v1728_v19, %v1500_v18  ;;  %v2139_v35 = vpop.eup %2138  ;;  %v481_v27 = vsub.f32 %v4144_v21, %v3139_v28 }
 0x2b7   :  { %v3714_v22 = vmul.f32 %v1724_v42, %v1612_v57  ;;  %v1836_v15 = vmul.f32 %v1612_v57, %v1612_v57  ;;  %v1598_v45 = vadd.f32 %v3470_v54, %v1565_v46  ;;  %v838_v53 = vadd.f32 %v822_v2, %v722_v37 }
 0x2b8   :  { %v1875_v4 = vsub.f32 %v3265_v9, %v1859_v6  ;;  %v1796_v25 = vmul.f32 %v2137_v20, %v1780_v24  ;;  %v1766_v8 = vmul.f32 %v2139_v35, %v3667_v52  ;;  %v4145_v40 = vsub.f32 %v4079_v39, %v3143_v47  ;;  %v3729_v20 = vpop.permute.xlu0 %641  ;;  %v4148_v6 = vld [vmem:[#allocation59_spill] sm:$0xff] }
 0x2b9   :  { %2144 = vrcp.f32 %v3714_v22  ;;  %v3725_v10 = vadd.f32 %v1836_v15, %v1820_v5  ;;  %v1614_v42 = vsub.f32 %v1598_v45, %v1498_v3  ;;  %v854_v23 = vadd.f32 %v838_v53, %v357_v29  ;;  %v1575_v5 = vpop.permute.xlu1 %1574  ;;  %v4150_v15 = vld [vmem:[#allocation40_spill] sm:$0xff]  ;;  %v4151_v53 = vld [vmem:[#allocation89_spill] sm:$0xff] }
 0x2ba   :  { %v3722_v11 = vand.u32 2147483647, %v4145_v40  ;;  %v330_v16 = vmul.f32 -1.0, %v3429_v31  ;;  %1891 = vst [vmem:[#allocation2 + $0x8] sm:$0xff] %v1875_v4  ;;  %v1860_v2 = vmul.f32 %v3661_v32, %v1796_v25  ;;  %v1782_v9 = vsub.f32 2.0, %v1766_v8  ;;  %v2141_v52 = vpop.eup %2140  ;;  %v4152_v25 = vld [vmem:[#allocation54_spill] sm:$0xff] }
 0x2bb   :  { %v497_v13 = vand.u32 2147483647, %v481_v27  ;;  %v332_v39 = vmul.f32 -1.0, %v3438_v61  ;;  %v3733_v49 = vmul.f32 %v3679_v58, %v1614_v42  ;;  %v1838_v51 = vmul.f32 %v1614_v42, %v1614_v42  ;;  %v4147_v61 = vld [vmem:[#allocation50_spill] sm:$0xff]  ;;  %v4149_v27 = vld [vmem:[#allocation7_spill] sm:$0xff]  ;;  %v4153_v40 = vld [vmem:[#allocation9_spill] sm:$0xff] }
 0x2bc   :  { %2146 = vrcp.f32 %v4146_v59  ;;  %v1876_v3 = vsub.f32 %v854_v23, %v1860_v2  ;;  %v1798_v37 = vmul.f32 %v2139_v35, %v1782_v9  ;;  %v1768_v31 = vmul.f32 %v2141_v52, %v3683_v50  ;;  %v650_v21 = vpop.permute.xlu0 %649 }
 0x2bd   :  { %v334_v32 = vmul.f32 -1.0, %v3444_v56  ;;  %2148 = vrcp.f32 %v3733_v49  ;;  %v3739_v57 = vadd.f32 %v1838_v51, %v1822_v43  ;;  %v1600_v29 = vadd.f32 %v3470_v54, %v1575_v5 }
 0x2be   :  { %v483_v58 = vsub.f32 %v4147_v61, %v3139_v28  ;;  %v811_v24 = vsub.f32 %v4148_v6, %v3194_v26  ;;  %1892 = vst [vmem:[#allocation2 + $0x10] sm:$0xff] %v1876_v3  ;;  %v1862_v46 = vmul.f32 %v3676_v48, %v1798_v37  ;;  %v1784_v35 = vsub.f32 2.0, %v1768_v31  ;;  %v4154_v48 = vld [vmem:[#allocation63_spill] sm:$0xff]  ;;  %v4155_v61 = vld [vmem:[#allocation62_spill] sm:$0xff] }
 0x2bf   :  { %v2143_v50 = vpop.eup %2142  ;;  %v613_v56 = vadd.f32 %v4149_v27, %v497_v13  ;;  %v3749_v45 = vmul.f32 -1.0, %v4150_v15  ;;  %v1616_v43 = vsub.f32 %v1600_v29, %v1500_v18  ;;  %v695_v4 = vsub.f32 %v650_v21, %v4151_v53  ;;  %v4158_v27 = vld [vmem:[#allocation65_spill] sm:$0xff] }
 0x2c0   :  { %v485_v8 = vsub.f32 %v4152_v25, %v3139_v28  ;;  %v1878_v42 = vsub.f32 %v4153_v40, %v1862_v46  ;;  %v1800_v23 = vmul.f32 %v2141_v52, %v1784_v35  ;;  %v1770_v2 = vmul.f32 %v2143_v50, %v3700_v62  ;;  %v658_v31 = vpop.permute.xlu0 %657  ;;  %v4157_v52 = vld [vmem:[#allocation32_spill] sm:$0xff]  ;;  %v4159_v25 = vld [vmem:[#allocation58_spill] sm:$0xff] }
 0x2c1   :  { %v346_v9 = vmul.f32 %v4154_v48, %v330_v16  ;;  %v3757_v51 = vmul.f32 %v1728_v19, %v1616_v43  ;;  %v1840_v5 = vmul.f32 %v1616_v43, %v1616_v43  ;;  %v711_v13 = vand.u32 2147483647, %v695_v4  ;;  %v4156_v16 = vld [vmem:[#allocation52_spill] sm:$0xff] }
 0x2c2   :  { %v499_v59 = vand.u32 2147483647, %v483_v58  ;;  %v827_v3 = vand.u32 2147483647, %v811_v24  ;;  %1894 = vst [vmem:[#allocation2 + $0x20] sm:$0xff] %v1878_v42  ;;  %v1864_v18 = vmul.f32 %v3691_v1, %v1800_v23  ;;  %v1786_v37 = vsub.f32 2.0, %v1770_v2 }
 0x2c3   :  { %v2145_v29 = vpop.eup %2144  ;;  %v813_v6 = vsub.f32 %v4155_v61, %v3194_v26  ;;  %2150 = vrcp.f32 %v3757_v51  ;;  %v3763_v62 = vadd.f32 %v1840_v5, %v1824_v34  ;;  %v727_v19 = vadd.f32 %v711_v13, %v4156_v16  ;;  %v4163_v16 = vld [vmem:[#allocation68_spill] sm:$0xff] }
 0x2c4   :  { %v1880_v46 = vsub.f32 %v4157_v52, %v1864_v18  ;;  %v1802_v35 = vmul.f32 %v2143_v50, %v1786_v37  ;;  %v1772_v58 = vmul.f32 %v2145_v29, %v3714_v22  ;;  %v697_v24 = vsub.f32 %v658_v31, %v4151_v53  ;;  %v666_v2 = vpop.permute.xlu0 %665  ;;  %v4160_v22 = vld [vmem:[#allocation67_spill] sm:$0xff]  ;;  %v4162_v31 = vld [vmem:[#allocation34_spill] sm:$0xff] }
 0x2c5   :  { %v501_v1 = vand.u32 2147483647, %v485_v8  ;;  %v362_v21 = vadd.f32 1.0, %v346_v9  ;;  %v348_v15 = vmul.f32 %v4158_v27, %v332_v39  ;;  %v843_v43 = vadd.f32 %v827_v3, %v727_v19  ;;  %v4161_v9 = vld [vmem:[#allocation10_spill] sm:$0xff]  ;;  %v4165_v27 = vld [vmem:[#allocation61_spill] sm:$0xff] }
 0x2c6   :  { %v2147_v4 = vpop.eup %2146  ;;  %v487_v40 = vsub.f32 %v4159_v25, %v3139_v28  ;;  %1896 = vst [vmem:[#allocation2 + $0x30] sm:$0xff] %v1880_v46  ;;  %v1866_v34 = vmul.f32 %v3707_v7, %v1802_v35  ;;  %v1788_v42 = vsub.f32 2.0, %v1772_v58  ;;  %v713_v23 = vand.u32 2147483647, %v697_v24 }
 0x2c7   :  { %v2149_v50 = vpop.eup %2148  ;;  %v829_v48 = vand.u32 2147483647, %v813_v6  ;;  %v815_v5 = vsub.f32 %v4160_v22, %v3194_v26  ;;  %v3775_v8 = vadd.f32 %v843_v43, %v362_v21  ;;  %v699_v39 = vsub.f32 %v666_v2, %v4151_v53  ;;  %v4164_v6 = vld [vmem:[#allocation70_spill] sm:$0xff]  ;;  %v4167_v2 = vld [vmem:[#allocation71_spill] sm:$0xff] }
 0x2c8   :  { %v1882_v13 = vsub.f32 %v4161_v9, %v1866_v34  ;;  %v1804_v3 = vmul.f32 %v2145_v29, %v1788_v42  ;;  %v1774_v18 = vmul.f32 %v2149_v50, %v3733_v49  ;;  %v729_v37 = vadd.f32 %v713_v23, %v613_v56  ;;  %v674_v21 = vpop.permute.xlu0 %673 }
 0x2c9   :  { %v615_v7 = vadd.f32 %v4162_v31, %v499_v59  ;;  %v364_v61 = vadd.f32 1.0, %v348_v15  ;;  %v350_v19 = vmul.f32 %v4163_v16, %v334_v32  ;;  %v715_v52 = vand.u32 2147483647, %v699_v39  ;;  %v4166_v15 = vld [vmem:[#allocation35_spill] sm:$0xff]  ;;  %v4169_v31 = vld [vmem:[#allocation25_spill] sm:$0xff]  ;;  %v4170_v16 = vld [vmem:[#allocation74_spill] sm:$0xff] }
 0x2ca   :  { %v817_v46 = vsub.f32 %v4164_v6, %v3194_v26  ;;  %1898 = vst [vmem:[#allocation2 + $0x40] sm:$0xff] %v1882_v13  ;;  %v1868_v35 = vmul.f32 %v3725_v10, %v1804_v3  ;;  %v1790_v58 = vsub.f32 2.0, %v1774_v18  ;;  %v845_v24 = vadd.f32 %v829_v48, %v729_v37  ;;  %v4168_v13 = vld [vmem:[#allocation73_spill] sm:$0xff] }
 0x2cb   :  { %v617_v29 = vadd.f32 %v4165_v27, %v501_v1  ;;  %v831_v43 = vand.u32 2147483647, %v815_v5  ;;  %v731_v49 = vadd.f32 %v715_v52, %v615_v7  ;;  %v701_v56 = vsub.f32 %v674_v21, %v4151_v53  ;;  %v4172_v27 = vld [vmem:[#allocation22_spill] sm:$0xff] }
 0x2cc   :  { %v503_v59 = vand.u32 2147483647, %v487_v40  ;;  %v1884_v25 = vsub.f32 %v4166_v15, %v1868_v35  ;;  %v1806_v32 = vmul.f32 %v2149_v50, %v1790_v58  ;;  %v3788_v34 = vadd.f32 %v845_v24, %v364_v61  ;;  %v682_v40 = vpop.permute.xlu0 %681 }
 0x2cd   :  { %v2151_v42 = vpop.eup %2150  ;;  %v366_v23 = vadd.f32 1.0, %v350_v19  ;;  %v352_v10 = vmul.f32 %v4167_v2, %v3749_v45  ;;  %v847_v22 = vadd.f32 %v831_v43, %v731_v49  ;;  %v717_v48 = vand.u32 2147483647, %v701_v56  ;;  %v4173_v56 = vld [vmem:[#allocation23_spill] sm:$0xff] }
 0x2ce   :  { %v833_v39 = vand.u32 2147483647, %v817_v46  ;;  %v338_v9 = vmul.f32 -1.0, %v2147_v4  ;;  %1900 = vst [vmem:[#allocation2 + $0x50] sm:$0xff] %v1884_v25  ;;  %v1870_v1 = vmul.f32 %v3739_v57, %v1806_v32  ;;  %v1776_v5 = vmul.f32 %v2151_v42, %v3757_v51  ;;  %v4171_v51 = vld [vmem:[#allocation20_spill] sm:$0xff]  ;;  %v4175_v25 = vld [vmem:[#allocation27_spill] sm:$0xff] }
 0x2cf   :  { %v819_v50 = vsub.f32 %v4168_v13, %v3194_v26  ;;  %v3796_v3 = vadd.f32 %v847_v22, %v366_v23  ;;  %v733_v18 = vadd.f32 %v717_v48, %v617_v29  ;;  %v703_v37 = vsub.f32 %v682_v40, %v4151_v53  ;;  %v4176_v22 = vld [vmem:[#allocation11_spill] sm:$0xff] }
 0x2d0   :  { %v619_v45 = vadd.f32 %v3722_v11, %v503_v59  ;;  %v1886_v7 = vsub.f32 %v4169_v31, %v1870_v1  ;;  %v1792_v61 = vsub.f32 2.0, %v1776_v5  ;;  %v368_v4 = vadd.f32 1.0, %v352_v10  ;;  %v1505_v46 = vpop.permute.xlu0 %1504  ;;  %v4174_v59 = vld [vmem:[#allocation46_spill] sm:$0xff] }
 0x2d1   :  { %v354_v19 = vmul.f32 %v4170_v16, %v338_v9  ;;  %v849_v57 = vadd.f32 %v833_v39, %v733_v18  ;;  %v719_v52 = vand.u32 2147483647, %v703_v37  ;;  %2152 = vrcp.f32 %v4171_v51  ;;  %v4178_v9 = vld [vmem:[#allocation14_spill] sm:$0xff]  ;;  %v4183_v51 = vld [vmem:[#allocation39_spill] sm:$0xff] }
 0x2d2   :  { %1902 = vst [vmem:[#allocation2 + $0x60] sm:$0xff] %v1886_v7  ;;  %v1808_v6 = vmul.f32 %v2151_v42, %v1792_v61  ;;  %v835_v35 = vand.u32 2147483647, %v819_v50  ;;  %v1586_v21 = vadd.f32 %v3470_v54, %v1505_v46  ;;  %2154 = vrcp.f32 %v4172_v27  ;;  %v4180_v50 = vld [vmem:[#allocation5_spill] sm:$0xff]  ;;  %v4181_v37 = vld [vmem:[#allocation6_spill] sm:$0xff] }
 0x2d3   :  { %v3803_v58 = vadd.f32 %v849_v57, %v368_v4  ;;  %v735_v24 = vadd.f32 %v719_v52, %v619_v45  ;;  %v370_v29 = vadd.f32 1.0, %v354_v19  ;;  %2156 = vrcp.f32 %v4173_v56  ;;  %v4182_v61 = vld [vmem:[#allocation37_spill] sm:$0xff]  ;;  %v4184_v46 = vld [vmem:[#allocation38_spill] sm:$0xff] }
 0x2d4   :  { %v1872_v11 = vmul.f32 %v3763_v62, %v1808_v6  ;;  %v1602_v49 = vsub.f32 %v1586_v21, %v3583_v55  ;;  %v472_v15 = vsub.f32 %v4174_v59, %v3139_v28  ;;  %v1520_v42 = vpop.permute.xlu0 %1519  ;;  %v572_v48 = vsub.f32 %v4176_v22, %v3143_v47  ;;  %v4177_v55 = vld [vmem:[#allocation13_spill] sm:$0xff]  ;;  %v4185_v21 = vld [vmem:[#allocation47_spill] sm:$0xff]  ;;  %v4186_v56 = vld [vmem:[#allocation30_spill] sm:$0xff] }
 0x2d5   :  { %v851_v43 = vadd.f32 %v835_v35, %v735_v24  ;;  %v1589_v62 = vadd.f32 %v3470_v54, %v1520_v42  ;;  %v575_v39 = vsub.f32 %v4177_v55, %v3143_v47  ;;  %v577_v1 = vsub.f32 %v4178_v9, %v3143_v47 }
 0x2d6   :  { %v1888_v32 = vsub.f32 %v4175_v25, %v1872_v11  ;;  %v1730_v2 = vmul.f32 %v3563_v30, %v1602_v49  ;;  %v1826_v10 = vmul.f32 %v1602_v49, %v1602_v49  ;;  %v688_v5 = vsub.f32 %v3694_v14, %v4151_v53  ;;  %v4179_v30 = vld [vmem:[#allocation36_spill] sm:$0xff] }
 0x2d7   :  { %v3813_v23 = vadd.f32 %v851_v43, %v370_v29  ;;  %v1605_v13 = vsub.f32 %v1589_v62, %v4179_v30  ;;  %v475_v18 = vsub.f32 %v4180_v50, %v3139_v28  ;;  %v477_v45 = vsub.f32 %v4181_v37, %v3139_v28 }
 0x2d8   :  { %1904 = vst [vmem:[#allocation2 + $0x70] sm:$0xff] %v1888_v32  ;;  %2158 = vrcp.f32 %v1730_v2  ;;  %v3826_v40 = vadd.f32 %v1826_v10, %v3601_v41  ;;  %v1530_v31 = vpop.permute.xlu0 %1529  ;;  %v488_v7 = vand.u32 2147483647, %v472_v15  ;;  %v588_v19 = vand.u32 2147483647, %v572_v48  ;;  %v4187_v48 = vld [vmem:[#allocation41_spill] sm:$0xff] }
 0x2d9   :  { %v1733_v47 = vmul.f32 %v4182_v61, %v1605_v13  ;;  %v1829_v4 = vmul.f32 %v1605_v13, %v1605_v13  ;;  %v1591_v16 = vadd.f32 %v3470_v54, %v1530_v31  ;;  %v591_v57 = vand.u32 2147483647, %v575_v39  ;;  %v4188_v39 = vld [vmem:[#allocation66_spill] sm:$0xff] }
 0x2da   :  { %v593_v41 = vand.u32 2147483647, %v577_v1  ;;  %v704_v52 = vand.u32 2147483647, %v688_v5  ;;  %v491_v24 = vand.u32 2147483647, %v475_v18  ;;  %v804_v11 = vsub.f32 %v4185_v21, %v3194_v26 }
 0x2db   :  { %v2153_v14 = vpop.eup %2152  ;;  %2160 = vrcp.f32 %v1733_v47  ;;  %v3836_v6 = vadd.f32 %v1829_v4, %v4183_v51  ;;  %v1607_v35 = vsub.f32 %v1591_v16, %v4184_v46  ;;  %v493_v28 = vand.u32 2147483647, %v477_v45  ;;  %v4190_v45 = vld [vmem:[#allocation64_spill] sm:$0xff]  ;;  %v4191_v4 = vld [vmem:[#allocation51_spill] sm:$0xff]  ;;  %v4193_v51 = vld [vmem:[#allocation69_spill] sm:$0xff] }
 0x2dc   :  { %v691_v27 = vsub.f32 %v3710_v60, %v4151_v53  ;;  %v1540_v29 = vpop.permute.xlu0 %1539  ;;  %v2155_v43 = vpop.eup %2154  ;;  %v604_v49 = vadd.f32 %v588_v19, %v488_v7  ;;  %v607_v42 = vadd.f32 %v591_v57, %v491_v24  ;;  %v323_v62 = vmul.f32 -1.0, %v2153_v14  ;;  %v4189_v60 = vld [vmem:[#allocation53_spill] sm:$0xff]  ;;  %v4192_v14 = vld [vmem:[#allocation55_spill] sm:$0xff] }
 0x2dd   :  { %v1735_v59 = vmul.f32 %v4186_v56, %v1607_v35  ;;  %v1831_v15 = vmul.f32 %v1607_v35, %v1607_v35  ;;  %v1593_v25 = vadd.f32 %v3470_v54, %v1540_v29  ;;  %v2157_v32 = vpop.eup %2156  ;;  %v609_v10 = vadd.f32 %v593_v41, %v493_v28 }
 0x2de   :  { %v720_v22 = vadd.f32 %v704_v52, %v604_v49  ;;  %v339_v1 = vmul.f32 %v323_v62, %v4189_v60  ;;  %v326_v5 = vmul.f32 -1.0, %v2155_v43  ;;  %v707_v30 = vand.u32 2147483647, %v691_v27  ;;  %v4194_v27 = vld [vmem:[#allocation56_spill] sm:$0xff] }
 0x2df   :  { %2162 = vrcp.f32 %v1735_v59  ;;  %v3846_v55 = vadd.f32 %v1831_v15, %v4187_v48  ;;  %v1609_v9 = vsub.f32 %v1593_v25, %v4188_v39  ;;  %v693_v13 = vsub.f32 %v3729_v20, %v4151_v53 }
 0x2e0   :  { %v1550_v50 = vpop.permute.xlu0 %1549  ;;  %v820_v37 = vand.u32 2147483647, %v804_v11  ;;  %v807_v16 = vsub.f32 %v4191_v4, %v3194_v26  ;;  %v809_v19 = vsub.f32 %v4192_v14, %v3194_v26  ;;  %v328_v57 = vmul.f32 -1.0, %v2157_v32 }
 0x2e1   :  { %v1737_v31 = vmul.f32 %v4190_v45, %v1609_v9  ;;  %v1833_v7 = vmul.f32 %v1609_v9, %v1609_v9  ;;  %v1595_v61 = vadd.f32 %v3470_v54, %v1550_v50  ;;  %v355_v46 = vadd.f32 1.0, %v339_v1  ;;  %v4195_v1 = vld [vmem:[#allocation12_spill] sm:$0xff] }
 0x2e2   :  { %v2159_v18 = vpop.eup %2158  ;;  %v836_v52 = vadd.f32 %v820_v37, %v720_v22  ;;  %v723_v35 = vadd.f32 %v707_v30, %v607_v42  ;;  %v709_v24 = vand.u32 2147483647, %v693_v13  ;;  %v342_v29 = vmul.f32 %v4194_v27, %v326_v5 }
 0x2e3   :  { %v1762_v41 = vmul.f32 %v2159_v18, %v1730_v2  ;;  %2164 = vrcp.f32 %v1737_v31  ;;  %v3859_v20 = vadd.f32 %v1833_v7, %v4193_v51  ;;  %v1611_v53 = vsub.f32 %v1595_v61, %v3551_v17 }
 0x2e4   :  { %v1560_v21 = vpop.permute.xlu0 %1559  ;;  %v823_v49 = vand.u32 2147483647, %v807_v16  ;;  %v825_v56 = vand.u32 2147483647, %v809_v19  ;;  %v852_v32 = vadd.f32 %v836_v52, %v355_v46  ;;  %v725_v22 = vadd.f32 %v709_v24, %v609_v10 }
 0x2e5   :  { %v1778_v28 = vsub.f32 2.0, %v1762_v41  ;;  %v2161_v11 = vpop.eup %2160  ;;  %v1739_v43 = vmul.f32 %v3531_v63, %v1611_v53  ;;  %v1835_v26 = vmul.f32 %v1611_v53, %v1611_v53  ;;  %v1597_v2 = vadd.f32 %v3470_v54, %v1560_v21 }
 0x2e6   :  { %v1765_v25 = vmul.f32 %v2161_v11, %v1733_v47  ;;  %v839_v62 = vadd.f32 %v823_v49, %v723_v35  ;;  %v358_v60 = vadd.f32 1.0, %v342_v29  ;;  %v4196_v47 = vld [vmem:[#allocation60_spill] sm:$0xff]  ;;  %v841_v45 = vadd.f32 %v825_v56, %v725_v22  ;;  %v4199_v29 = vld [vmem:[#allocation42_spill] sm:$0xff] }
 0x2e7   :  { %v1794_v15 = vmul.f32 %v2159_v18, %v1778_v28  ;;  %2166 = vrcp.f32 %v1739_v43  ;;  %v1851_v17 = vadd.f32 %v1835_v26, %v3575_v12  ;;  %v1613_v42 = vsub.f32 %v1597_v2, %v3577_v36  ;;  %v4198_v28 = vld [vmem:[#allocation21_spill] sm:$0xff] }
 0x2e8   :  { %v1781_v39 = vsub.f32 2.0, %v1765_v25  ;;  %v1570_v9 = vpop.permute.xlu0 %1569  ;;  %v344_v50 = vmul.f32 %v4196_v47, %v328_v57 }
 0x2e9   :  { %v1858_v48 = vmul.f32 %v3826_v40, %v1794_v15  ;;  %v2163_v63 = vpop.eup %2162  ;;  %v1741_v5 = vmul.f32 %v4195_v1, %v1613_v42  ;;  %v1837_v30 = vmul.f32 %v1613_v42, %v1613_v42  ;;  %v1599_v13 = vadd.f32 %v3470_v54, %v1570_v9 }
 0x2ea   :  { %v1797_v37 = vmul.f32 %v2161_v11, %v1781_v39  ;;  %v1767_v12 = vmul.f32 %v2163_v63, %v1735_v59  ;;  %v855_v40 = vadd.f32 %v839_v62, %v358_v60  ;;  %v360_v41 = vadd.f32 1.0, %v344_v50 }
 0x2eb   :  { %v1874_v18 = vsub.f32 %v852_v32, %v1858_v48  ;;  %2168 = vrcp.f32 %v1741_v5  ;;  %v1853_v36 = vadd.f32 %v1837_v30, %v3605_v0  ;;  %v1615_v10 = vsub.f32 %v1599_v13, %v3611_v33  ;;  %v4197_v0 = vld [vmem:[#allocation43_spill] sm:$0xff] }
 0x2ec   :  { %v1861_v7 = vmul.f32 %v3836_v6, %v1797_v37  ;;  %v1783_v61 = vsub.f32 2.0, %v1767_v12  ;;  %v1580_v4 = vpop.permute.xlu0 %1579  ;;  %v857_v46 = vadd.f32 %v841_v45, %v360_v41 }
 0x2ed   :  { %1890 = vst [vmem:[#allocation2] sm:$0xff] %v1874_v18  ;;  %v2165_v16 = vpop.eup %2164  ;;  %v1743_v14 = vmul.f32 %v3586_v38, %v1615_v10  ;;  %v1839_v19 = vmul.f32 %v1615_v10, %v1615_v10  ;;  %v1601_v57 = vadd.f32 %v3470_v54, %v1580_v4 }
 0x2ee   :  { %v1877_v59 = vsub.f32 %v855_v40, %v1861_v7  ;;  %v1799_v52 = vmul.f32 %v2163_v63, %v1783_v61  ;;  %v1769_v51 = vmul.f32 %v2165_v16, %v1737_v31 }
 0x2ef   :  { %2170 = vrcp.f32 %v1743_v14  ;;  %v1855_v33 = vadd.f32 %v1839_v19, %v4197_v0  ;;  %v1617_v53 = vsub.f32 %v1601_v57, %v3629_v44 }
 0x2f0   :  { %1893 = vst [vmem:[#allocation2 + $0x18] sm:$0xff] %v1877_v59  ;;  %v1863_v6 = vmul.f32 %v3846_v55, %v1799_v52  ;;  %v1785_v35 = vsub.f32 2.0, %v1769_v51 }
 0x2f1   :  { %v2167_v24 = vpop.eup %2166  ;;  %v1745_v38 = vmul.f32 %v4198_v28, %v1617_v53  ;;  %v1841_v21 = vmul.f32 %v1617_v53, %v1617_v53 }
 0x2f2   :  { %v1879_v11 = vsub.f32 %v857_v46, %v1863_v6  ;;  %v1801_v54 = vmul.f32 %v2165_v16, %v1785_v35  ;;  %v1771_v27 = vmul.f32 %v2167_v24, %v1739_v43 }
 0x2f3   :  { %2172 = vrcp.f32 %v1745_v38  ;;  %v1857_v31 = vadd.f32 %v1841_v21, %v4199_v29 }
 0x2f4   :  { %1895 = vst [vmem:[#allocation2 + $0x28] sm:$0xff] %v1879_v11  ;;  %v1865_v26 = vmul.f32 %v3859_v20, %v1801_v54  ;;  %v1787_v2 = vsub.f32 2.0, %v1771_v27 }
 0x2f5   :  { %v2169_v44 = vpop.eup %2168 }
 0x2f6   :  { %v1881_v49 = vsub.f32 %v3775_v8, %v1865_v26  ;;  %v1803_v56 = vmul.f32 %v2167_v24, %v1787_v2  ;;  %v1773_v55 = vmul.f32 %v2169_v44, %v1741_v5 }
 0x2f8   :  { %1897 = vst [vmem:[#allocation2 + $0x38] sm:$0xff] %v1881_v49  ;;  %v1867_v15 = vmul.f32 %v1851_v17, %v1803_v56  ;;  %v1789_v25 = vsub.f32 2.0, %v1773_v55 }
 0x2f9   :  { %v2171_v32 = vpop.eup %2170 }
 0x2fa   :  { %v1883_v42 = vsub.f32 %v3788_v34, %v1867_v15  ;;  %v1805_v62 = vmul.f32 %v2169_v44, %v1789_v25  ;;  %v1775_v43 = vmul.f32 %v2171_v32, %v1743_v14 }
 0x2fc   :  { %1899 = vst [vmem:[#allocation2 + $0x48] sm:$0xff] %v1883_v42  ;;  %v1869_v22 = vmul.f32 %v1853_v36, %v1805_v62  ;;  %v1791_v48 = vsub.f32 2.0, %v1775_v43 }
 0x2fd   :  { %v2173_v39 = vpop.eup %2172 }
 0x2fe   :  { %v1885_v20 = vsub.f32 %v3796_v3, %v1869_v22  ;;  %v1807_v9 = vmul.f32 %v2171_v32, %v1791_v48  ;;  %v1777_v63 = vmul.f32 %v2173_v39, %v1745_v38 }
 0x300   :  { %1901 = vst [vmem:[#allocation2 + $0x58] sm:$0xff] %v1885_v20  ;;  %v1871_v8 = vmul.f32 %v1855_v33, %v1807_v9  ;;  %v1793_v60 = vsub.f32 2.0, %v1777_v63 }
 0x302   :  { %v1887_v1 = vsub.f32 %v3803_v58, %v1871_v8  ;;  %v1809_v17 = vmul.f32 %v2173_v39, %v1793_v60 }
 0x304   :  { %1903 = vst [vmem:[#allocation2 + $0x68] sm:$0xff] %v1887_v1  ;;  %v1873_v34 = vmul.f32 %v1857_v31, %v1809_v17 }
 0x306   :  { %v1889_v5 = vsub.f32 %v3813_v23, %v1873_v34 }
 0x308   :  { %1905 = vst [vmem:[#allocation2 + $0x78] sm:$0xff] %v1889_v5 }
 0x309   :  { %2193 = shalt.err (!%p2190_p4)
}
 0x30a   :  { %s2194_s25 = scalar_lea.hbm %s3903_s4, 2048 }
 0x30b   :  { %p2195_p5 = scmp.ne.s32.totalorder %s3903_s4, %s2194_s25  ;;  %p2198_p6 = scmp.lt.u32.totalorder %s2194_s25, %s3903_s4 }
 0x30d   :  { %p2200_p7 = pnand %p2198_p6, %p2195_p5 }
 0x30f   :  { %2203 = shalt.err (!%p2200_p7)
}
 0x310   :  { %s2213_s29 = smov 128   ;;  %s2214_s30 = smov 8  }
 0x311   :  { %1917 = dma.vmem_to_hbm [thread:$0]  %s1912_s22, 2048, %s3903_s4, [#allocation3], %s2213_s29, %s2213_s29, %s2214_s30  }
 0x312   :  { %2204 = dma.done.wait [#allocation3], 2048  }
 0x313   :  { %2205 = vsyncadd [#allocation3], 4294965248 }
 0x314   :  { %1921 = vsyncpa [#allocation3], 1 }

</bundles_post_ra>
